<compile_context>
chip_gen: v6e
topology: v6e:2x2x1
jax: 0.10.0
libtpu: 0.0.40
codegen_flags: <defaults>
</compile_context>

<pallas_src>
import functools

import jax
import jax.numpy as jnp
from jax.experimental import pallas as pl
from jax.experimental.pallas import tpu as pltpu


def _round_up(x, m):
    return ((x + m - 1) // m) * m


def _vq_kernel(x_ref, eb_ref, ef_ref, e2h_ref, q_ref, idx_ref, lp_ref, *,
               n_valid, tile_n):
    i = pl.program_id(0)

    x = x_ref[...].astype(jnp.float32)            # (TN, D) f32
    eb = eb_ref[...]                              # (Kp, D) bf16, pad rows zero
    ef = ef_ref[...].astype(jnp.float32)          # (Kp, D) f32, pad rows zero
    e2h = e2h_ref[...]                            # (1, Kp) f32 = 0.5*||e||^2, pad = +BIG

    tn, _ = x.shape
    kp = eb.shape[0]

    # argmin_k ||x - e_k||^2 == argmin_k (0.5*||e_k||^2 - x.e_k); the ||x||^2
    # term is row-constant and the 2x scale is folded into e2h (wrapper).
    # bf16 operands -> single-pass MXU matmul with f32 accumulation.
    xe = jax.lax.dot_general(
        x.astype(jnp.bfloat16), eb,
        dimension_numbers=(((1,), (1,)), ((), ())),
        preferred_element_type=jnp.float32)       # (TN, Kp)
    scores = e2h - xe                             # (TN, Kp) f32
    idx = jnp.argmin(scores, axis=1).astype(jnp.int32)   # (TN,)

    # lane-dense index store: (TN,) -> (TN//128, 128)
    idx_ref[...] = idx.reshape(idx_ref.shape)

    # gather codebook rows with a one-hot matmul (MXU-friendly gather); the
    # one-hot is built from a (1, Kp) lane iota that broadcasts — no (TN, Kp)
    # int32 temporary is materialized.
    lane = jax.lax.broadcasted_iota(jnp.int32, (1, kp), 1)
    onehot = (lane == idx[:, None]).astype(jnp.float32)   # (TN, Kp)
    q = jnp.dot(onehot, ef, preferred_element_type=jnp.float32)  # (TN, D)
    q_ref[...] = q.astype(q_ref.dtype)

    # per-tile, per-lane loss partials (cross-sublane reduce only); rows beyond
    # the true N (padding) are masked out of the loss.
    row = i * tile_n + jax.lax.broadcasted_iota(jnp.int32, (tn, 1), 0)
    diff = (q - x) * (row < n_valid).astype(jnp.float32)
    lp_ref[...] = jnp.sum(diff * diff, axis=0, keepdims=True)[None]   # (1,1,D)


def vector_quantizer_forward(inputs, embedding, commitment_cost=0.25,
                             max_tile_n=2048):
    """Forward pass of VectorQuantizer.

    inputs:    (B, H, W, D) float32, channel-last (D == embedding_dim)
    embedding: (K, D) float32 codebook
    returns (quantized (B,H,W,D), encoding_indices (N,1) int32, loss scalar)
    """
    k, d = embedding.shape
    orig_shape = inputs.shape
    flat = inputs.reshape(-1, d)
    n = flat.shape[0]

    # --- row tiling: lane-aligned tiles, pad N up and mask in-kernel; prefer
    #     >= 2 grid steps so both v7x TensorCores get work.
    n128 = _round_up(n, 128)
    tile_n = min(max_tile_n, _round_up((n128 + 1) // 2, 128))
    n_pad = _round_up(n, tile_n)
    if n_pad != n:
        flat = jnp.pad(flat, ((0, n_pad - n), (0, 0)))
    num_tiles = n_pad // tile_n

    # --- codebook: pad K to a multiple of 128 lanes; precompute 0.5*||e||^2
    #     once (2x scale folded in); bf16 copy for the scores MXU matmul.
    k_pad = _round_up(k, 128)
    e_f32 = embedding.astype(jnp.float32)
    if k_pad != k:
        e_f32 = jnp.pad(e_f32, ((0, k_pad - k), (0, 0)))
    e_bf16 = e_f32.astype(jnp.bfloat16)
    e2_half = 0.5 * jnp.sum(e_f32 * e_f32, axis=1)[None, :]   # (1, Kp)
    if k_pad != k:
        lane = jnp.arange(k_pad)[None, :]
        e2_half = jnp.where(lane < k, e2_half, jnp.float32(1e30))  # pad never wins

    kernel = functools.partial(_vq_kernel, n_valid=n, tile_n=tile_n)

    q_flat, idx2d, lp = pl.pallas_call(
        kernel,
        out_shape=(
            jax.ShapeDtypeStruct((n_pad, d), inputs.dtype),          # quantized
            jax.ShapeDtypeStruct((n_pad // 128, 128), jnp.int32),    # indices (lane-dense)
            jax.ShapeDtypeStruct((num_tiles, 1, d), jnp.float32),    # loss partials
        ),
        grid_spec=pltpu.PrefetchScalarGridSpec(
            num_scalar_prefetch=0,
            grid=(num_tiles,),
            in_specs=[
                pl.BlockSpec((tile_n, d), lambda i: (i, 0)),         # input rows tile
                pl.BlockSpec((k_pad, d), lambda i: (0, 0)),          # resident bf16 codebook
                pl.BlockSpec((k_pad, d), lambda i: (0, 0)),          # resident f32 codebook
                pl.BlockSpec((1, k_pad), lambda i: (0, 0)),          # resident 0.5*||e||^2
            ],
            out_specs=[
                pl.BlockSpec((tile_n, d), lambda i: (i, 0)),
                pl.BlockSpec((tile_n // 128, 128), lambda i: (i, 0)),
                pl.BlockSpec((1, 1, d), lambda i: (i, 0, 0)),
            ],
        ),
        compiler_params=pltpu.CompilerParams(
            dimension_semantics=("parallel",),     # tiles are independent
            vmem_limit_bytes=32 * 1024 * 1024,
        ),
    )(flat, e_bf16, e_f32, e2_half)

    quantized = q_flat[:n].reshape(orig_shape)
    indices = idx2d.reshape(-1)[:n][:, None]
    # (embedding_loss + commitment_loss) = (1 + commitment_cost) * MSE
    loss = jnp.sum(lp) * jnp.float32((1.0 + commitment_cost) / (n * d))
    return quantized, indices, loss


if __name__ == "__main__":
    # Deterministic synthetic setup (no checkpoint loading).
    num_embeddings = 512     # module default
    embedding_dim = 32       # latent_shape[0]
    commitment_cost = 0.25

    B, H, W = 2, 8, 8        # N = B*H*W = 128 rows

    key = jax.random.PRNGKey(0)
    k_x, k_e = jax.random.split(key)
    inputs = jax.random.normal(k_x, (B, H, W, embedding_dim), dtype=jnp.float32)
    embedding = jax.random.normal(
        k_e, (num_embeddings, embedding_dim), dtype=jnp.float32
    )  # mirrors nn.Parameter(torch.randn(K, D))

    quantized, indices, loss = vector_quantizer_forward(
        inputs, embedding, commitment_cost=commitment_cost
    )
    jax.block_until_ready((quantized, indices, loss))

    # Lightweight correctness checks in plain JAX (same math as the PyTorch
    # module, with a tolerance for the bf16 scores matmul which may flip
    # argmin on near-ties).
    flat = inputs.reshape(-1, embedding_dim)
    idx_k = indices[:, 0]
    assert idx_k.dtype == jnp.int32
    assert bool(jnp.all((idx_k >= 0) & (idx_k < num_embeddings)))

    # 1) chosen code is (near-)nearest under full-precision distances.
    dist_full = (
        jnp.sum(flat ** 2, axis=1, keepdims=True)
        + jnp.sum(embedding ** 2, axis=1)
        - 2.0 * flat @ embedding.T
    )
    chosen = jnp.take_along_axis(dist_full, indices, axis=1)[:, 0]
    best = jnp.min(dist_full, axis=1)
    assert bool(jnp.all(chosen <= best + 0.5))

    # 2) quantized values are the exact codebook rows of the chosen indices.
    q_from_idx = embedding[idx_k]
    assert jnp.allclose(quantized.reshape(-1, embedding_dim), q_from_idx, atol=1e-4)

    # 3) loss matches (1 + commitment_cost) * MSE(quantized, inputs).
    loss_ref = (1.0 + commitment_cost) * jnp.mean(
        (q_from_idx.reshape(inputs.shape) - inputs) ** 2
    )
    assert jnp.allclose(loss, loss_ref, rtol=1e-4, atol=1e-5)

    print("KERNEL_OK")
</pallas_src>

<mosaic_0001>
module attributes {stable_mosaic.version = 11 : i64} {
  func.func @_vq_kernel(%arg0: i32, %arg1: memref<128x32xf32, #tpu.memory_space<vmem>>, %arg2: memref<512x32xbf16, #tpu.memory_space<vmem>>, %arg3: memref<512x32xf32, #tpu.memory_space<vmem>>, %arg4: memref<1x512xf32, #tpu.memory_space<vmem>>, %arg5: memref<128x32xf32, #tpu.memory_space<vmem>>, %arg6: memref<1x128xi32, #tpu.memory_space<vmem>>, %arg7: memref<1x1x32xf32, #tpu.memory_space<vmem>>) attributes {dimension_semantics = [#tpu.dimension_semantics<parallel>], iteration_bounds = array<i64: 1>, scalar_prefetch = 0 : i64, scratch_operands = 0 : i64, tpu.core_type = #tpu.core_type<tc>, window_params = [{transform_indices = @transform_0, window_bounds = array<i64: 128, 32>}, {pipeline_mode = #tpu.pipeline_mode<synchronous>, transform_indices = @transform_1, window_bounds = array<i64: 512, 32>}, {pipeline_mode = #tpu.pipeline_mode<synchronous>, transform_indices = @transform_2, window_bounds = array<i64: 512, 32>}, {pipeline_mode = #tpu.pipeline_mode<synchronous>, transform_indices = @transform_3, window_bounds = array<i64: 1, 512>}, {transform_indices = @transform_4, window_bounds = array<i64: 128, 32>}, {transform_indices = @transform_5, window_bounds = array<i64: 1, 128>}, {transform_indices = @transform_6, window_bounds = array<i64: 1, 1, 32>}]} {
    %c0 = arith.constant 0 : index
    %c0_0 = arith.constant 0 : index
    %0 = vector.load %arg1[%c0, %c0_0] : memref<128x32xf32, #tpu.memory_space<vmem>>, vector<128x32xf32>
    %c0_1 = arith.constant 0 : index
    %c0_2 = arith.constant 0 : index
    %1 = vector.load %arg2[%c0_1, %c0_2] : memref<512x32xbf16, #tpu.memory_space<vmem>>, vector<512x32xbf16>
    %c0_3 = arith.constant 0 : index
    %c0_4 = arith.constant 0 : index
    %2 = vector.load %arg3[%c0_3, %c0_4] : memref<512x32xf32, #tpu.memory_space<vmem>>, vector<512x32xf32>
    %c0_5 = arith.constant 0 : index
    %c0_6 = arith.constant 0 : index
    %3 = vector.load %arg4[%c0_5, %c0_6] : memref<1x512xf32, #tpu.memory_space<vmem>>, vector<1x512xf32>
    %4 = arith.truncf %0 : vector<128x32xf32> to vector<128x32xbf16>
    %cst = arith.constant dense<0.000000e+00> : vector<128x512xf32>
    %5 = tpu.matmul %4, %1, %cst {dimension_numbers = #tpu.dot_dimension_numbers<[1], [1], [0], [0], [0, 0, 1, 0], [], []>} : vector<128x32xbf16>, vector<512x32xbf16>, vector<128x512xf32> -> vector<128x512xf32>
    %6 = vector.broadcast %3 : vector<1x512xf32> to vector<128x512xf32>
    %7 = arith.subf %6, %5 : vector<128x512xf32>
    %8 = tpu.reduce_index %7 {axis = 1 : i32, kind = #tpu.reduction_kind<arg_min>} : vector<128x512xf32> -> vector<128xi32>
    %9 = vector.shape_cast %8 : vector<128xi32> to vector<1x128xi32>
    %c0_7 = arith.constant 0 : index
    %c0_8 = arith.constant 0 : index
    %10 = vector.load %arg6[%c0_7, %c0_8] : memref<1x128xi32, #tpu.memory_space<vmem>>, vector<1x128xi32>
    tpu.vector_store %arg6[%c0_7, %c0_8], %9 {strides = array<i32>} : memref<1x128xi32, #tpu.memory_space<vmem>>, vector<1x128xi32>,
    %11 = tpu.iota {dimensions = array<i32: 1>} : vector<1x512xi32>
    %12 = vector.shape_cast %8 : vector<128xi32> to vector<128x1xi32>
    %13 = vector.broadcast %11 : vector<1x512xi32> to vector<128x512xi32>
    %14 = vector.broadcast %12 : vector<128x1xi32> to vector<128x512xi32>
    %15 = arith.cmpi eq, %13, %14 : vector<128x512xi32>
    %16 = arith.extui %15 : vector<128x512xi1> to vector<128x512xi32>
    %17 = arith.sitofp %16 : vector<128x512xi32> to vector<128x512xf32>
    %cst_9 = arith.constant dense<0.000000e+00> : vector<128x32xf32>
    %18 = tpu.matmul %17, %2, %cst_9 {dimension_numbers = #tpu.dot_dimension_numbers<[1], [0], [0], [1], [0, 0, 1, 1], [], []>} : vector<128x512xf32>, vector<512x32xf32>, vector<128x32xf32> -> vector<128x32xf32>
    %c0_10 = arith.constant 0 : index
    %c0_11 = arith.constant 0 : index
    %19 = vector.load %arg5[%c0_10, %c0_11] : memref<128x32xf32, #tpu.memory_space<vmem>>, vector<128x32xf32>
    tpu.vector_store %arg5[%c0_10, %c0_11], %18 {strides = array<i32>} : memref<128x32xf32, #tpu.memory_space<vmem>>, vector<128x32xf32>,
    %c128_i32 = arith.constant 128 : i32
    %20 = arith.muli %arg0, %c128_i32 : i32
    %21 = tpu.iota {dimensions = array<i32: 0>} : vector<128x1xi32>
    %22 = vector.broadcast %20 : i32 to vector<128x1xi32>
    %23 = arith.addi %22, %21 : vector<128x1xi32>
    %24 = arith.subf %18, %0 : vector<128x32xf32>
    %c128_i32_12 = arith.constant 128 : i32
    %25 = vector.broadcast %c128_i32_12 : i32 to vector<128x1xi32>
    %26 = arith.cmpi slt, %23, %25 : vector<128x1xi32>
    %27 = arith.extui %26 : vector<128x1xi1> to vector<128x1xi32>
    %28 = arith.sitofp %27 : vector<128x1xi32> to vector<128x1xf32>
    %29 = vector.broadcast %28 : vector<128x1xf32> to vector<128x32xf32>
    %30 = arith.mulf %24, %29 : vector<128x32xf32>
    %31 = arith.mulf %30, %30 : vector<128x32xf32>
    %cst_13 = arith.constant dense<0.000000e+00> : vector<32xf32>
    %32 = vector.multi_reduction <add>, %31, %cst_13 [0] : vector<128x32xf32> to vector<32xf32>
    %33 = vector.shape_cast %32 : vector<32xf32> to vector<1x32xf32>
    %34 = vector.shape_cast %33 : vector<1x32xf32> to vector<1x1x32xf32>
    %c0_14 = arith.constant 0 : index
    %c0_15 = arith.constant 0 : index
    %c0_16 = arith.constant 0 : index
    %35 = vector.load %arg7[%c0_14, %c0_15, %c0_16] : memref<1x1x32xf32, #tpu.memory_space<vmem>>, vector<1x1x32xf32>
    tpu.vector_store %arg7[%c0_14, %c0_15, %c0_16], %34 {strides = array<i32>} : memref<1x1x32xf32, #tpu.memory_space<vmem>>, vector<1x1x32xf32>,
    return
  }
  func.func @transform_0(%arg0: i32) -> (i32, i32) {
    %c0_i32 = arith.constant 0 : i32
    %c0_i32_0 = arith.constant 0 : i32
    return %arg0, %c0_i32 : i32, i32
  }
  func.func @transform_1(%arg0: i32) -> (i32, i32) {
    %c0_i32 = arith.constant 0 : i32
    %c0_i32_0 = arith.constant 0 : i32
    %c0_i32_1 = arith.constant 0 : i32
    return %c0_i32, %c0_i32_0 : i32, i32
  }
  func.func @transform_2(%arg0: i32) -> (i32, i32) {
    %c0_i32 = arith.constant 0 : i32
    %c0_i32_0 = arith.constant 0 : i32
    %c0_i32_1 = arith.constant 0 : i32
    return %c0_i32, %c0_i32_0 : i32, i32
  }
  func.func @transform_3(%arg0: i32) -> (i32, i32) {
    %c0_i32 = arith.constant 0 : i32
    %c0_i32_0 = arith.constant 0 : i32
    %c0_i32_1 = arith.constant 0 : i32
    return %c0_i32, %c0_i32_0 : i32, i32
  }
  func.func @transform_4(%arg0: i32) -> (i32, i32) {
    %c0_i32 = arith.constant 0 : i32
    %c0_i32_0 = arith.constant 0 : i32
    return %arg0, %c0_i32 : i32, i32
  }
  func.func @transform_5(%arg0: i32) -> (i32, i32) {
    %c0_i32 = arith.constant 0 : i32
    %c0_i32_0 = arith.constant 0 : i32
    return %arg0, %c0_i32 : i32, i32
  }
  func.func @transform_6(%arg0: i32) -> (i32, i32, i32) {
    %c0_i32 = arith.constant 0 : i32
    %c0_i32_0 = arith.constant 0 : i32
    %c0_i32_1 = arith.constant 0 : i32
    return %arg0, %c0_i32, %c0_i32_0 : i32, i32, i32
  }
}

</mosaic_0001>

<bundles_post_ra>
// kernel: tpu_custom_call.1
= control target key start
LH: loop header
LB: loop body
LE: loop exit
PB: predicated region body
PF: predicated region fallthrough
CT: control target
= control target key end

     0   :  { %12 = vsyncpa [#allocation3], 0  ;;  %vm336_vm0 = vcmask 261120   ;;  %s3280_s0 = inlined_call_operand.vmem [shape: f32[128,32], index: 0, kind: input, shape index: {}]   ;;  %s3281_s1 = inlined_call_operand.vmem [shape: bf16[512,32], index: 1, kind: input, shape index: {}]   ;;  %s3282_s2 = inlined_call_operand.vmem [shape: f32[512,32], index: 2, kind: input, shape index: {}]   ;;  %s3283_s3 = inlined_call_operand.vmem [shape: f32[1,512], index: 3, kind: input, shape index: {}]   ;;  %s3284_s4 = inlined_call_operand.vmem [shape: f32[128,32], index: 4, kind: output, shape index: {0}]   ;;  %s3285_s5 = inlined_call_operand.hbm [shape: s32[1,128], index: 5, kind: output, shape index: {1}]   ;;  %s3286_s6 = inlined_call_operand.hbm [shape: f32[1,1,32], index: 6, kind: output, shape index: {2}]  }
   0x1   :  { %v2243_v0 = vld [vmem:[%s3281_s1 + $0x78] sm:$0xff]   ;;  %v2247_v5 = vld [vmem:[%s3281_s1 + $0x70] sm:$0xff]   ;;  %v2251_v11 = vld [vmem:[%s3281_s1 + $0x68] sm:$0xff]  }
   0x2   :  { %v2244_v1 = vld [vmem:[%s3281_s1 + $0xf8] sm:$0xff]   ;;  %2207 = vmatprep.subr.msk.bf16.mxu0 %vm336_vm0, %v2243_v0  ;;  %v2248_v7 = vld [vmem:[%s3281_s1 + $0xf0] sm:$0xff]   ;;  %v2252_v13 = vld [vmem:[%s3281_s1 + $0xe8] sm:$0xff]  }
   0x3   :  { %v2245_v2 = vld [vmem:[%s3281_s1 + $0x38] sm:$0xff]   ;;  %2215 = vmatprep.subr.msk.bf16.mxu1 %vm336_vm0, %v2244_v1  ;;  %v2249_v8 = vld [vmem:[%s3281_s1 + $0x30] sm:$0xff]   ;;  %v2253_v14 = vld [vmem:[%s3281_s1 + $0x28] sm:$0xff]  }
   0x4   :  { %v2246_v3 = vld [vmem:[%s3281_s1 + $0xb8] sm:$0xff]   ;;  %v383_v4 = vsel %vm336_vm0, %v2245_v2, 0  ;;  %v2250_v9 = vld [vmem:[%s3281_s1 + $0xb0] sm:$0xff]   ;;  %v380_v10 = vsel %vm336_vm0, %v2249_v8, 0  ;;  %v2254_v15 = vld [vmem:[%s3281_s1 + $0xa8] sm:$0xff]   ;;  %v377_v16 = vsel %vm336_vm0, %v2253_v14, 0 }
   0x5   :  { %1984 = vmatpush3.bf16.xpose.msra.mxu0 %v383_v4  ;;  %v431_v6 = vsel %vm336_vm0, %v2246_v3, 0  ;;  %v428_v12 = vsel %vm336_vm0, %v2250_v9, 0  ;;  %v2255_v17 = vld [vmem:[%s3281_s1 + $0x60] sm:$0xff]   ;;  %v425_v18 = vsel %vm336_vm0, %v2254_v15, 0  ;;  %v2259_v23 = vld [vmem:[%s3281_s1 + $0x58] sm:$0xff]   ;;  %v24_v29 = vld [vmem:[%s3280_s0 + $0x8] sm:$0xff] }
   0x6   :  { %2016 = vmatpush3.bf16.xpose.msra.mxu1 %v431_v6  ;;  %2208 = vmatprep.subr.msk.bf16.mxu0 %vm336_vm0, %v2247_v5  ;;  %v2256_v19 = vld [vmem:[%s3281_s1 + $0xe0] sm:$0xff]   ;;  %v2260_v25 = vld [vmem:[%s3281_s1 + $0xd8] sm:$0xff]   ;;  %v2263_v32 = vld [vmem:[%s3281_s1 + $0x50] sm:$0xff]  }
   0x7   :  { %2216 = vmatprep.subr.msk.bf16.mxu1 %vm336_vm0, %v2248_v7  ;;  %v2257_v20 = vld [vmem:[%s3281_s1 + $0x20] sm:$0xff]   ;;  %v2261_v26 = vld [vmem:[%s3281_s1 + $0x18] sm:$0xff]   ;;  %v2264_v34 = vld [vmem:[%s3281_s1 + $0xd0] sm:$0xff]  }
   0x8   :  { %v2258_v21 = vld [vmem:[%s3281_s1 + $0xa0] sm:$0xff]   ;;  %v374_v22 = vsel %vm336_vm0, %v2257_v20, 0  ;;  %v2262_v27 = vld [vmem:[%s3281_s1 + $0x98] sm:$0xff]   ;;  %v371_v31 = vsel %vm336_vm0, %v2261_v26, 0 }
   0x9   :  { %v422_v24 = vsel %vm336_vm0, %v2258_v21, 0  ;;  %v23_v28 = vld [vmem:[%s3280_s0] sm:$0xff]  ;;  %v419_v33 = vsel %vm336_vm0, %v2262_v27, 0 }
   0xa   :  { %v168_v30 = vpack.c.bf16 %v24_v29, %v23_v28 }
   0xc   :  { %1999 = vmatprep.mubr.msk.bf16.mxu0 %vm336_vm0, %v168_v30  ;;  %2031 = vmatprep.mubr.msk.bf16.mxu1 %vm336_vm0, %v168_v30 }
   0xd   :  { %1986 = vmatpush3.bf16.xpose.msra.mxu0 %v380_v10 }
   0xe   :  { %2018 = vmatpush3.bf16.xpose.msra.mxu1 %v428_v12  ;;  %2209 = vmatprep.subr.msk.bf16.mxu0 %vm336_vm0, %v2251_v11 }
   0xf   :  { %2217 = vmatprep.subr.msk.bf16.mxu1 %vm336_vm0, %v2252_v13 }
  0x15   :  { %1988 = vmatpush3.bf16.xpose.msra.mxu0 %v377_v16 }
  0x16   :  { %2020 = vmatpush3.bf16.xpose.msra.mxu1 %v425_v18  ;;  %2210 = vmatprep.subr.msk.bf16.mxu0 %vm336_vm0, %v2255_v17 }
  0x17   :  { %2218 = vmatprep.subr.msk.bf16.mxu1 %vm336_vm0, %v2256_v19 }
  0x1d   :  { %1990 = vmatpush3.bf16.xpose.msra.mxu0 %v374_v22 }
  0x1e   :  { %2022 = vmatpush3.bf16.xpose.msra.mxu1 %v422_v24  ;;  %2211 = vmatprep.subr.msk.bf16.mxu0 %vm336_vm0, %v2259_v23 }
  0x1f   :  { %2219 = vmatprep.subr.msk.bf16.mxu1 %vm336_vm0, %v2260_v25 }
  0x25   :  { %1992 = vmatpush3.bf16.xpose.msra.mxu0 %v371_v31 }
  0x26   :  { %13 = vsyncpa [#allocation5], 0  ;;  %2024 = vmatpush3.bf16.xpose.msra.mxu1 %v419_v33  ;;  %2212 = vmatprep.subr.msk.bf16.mxu0 %vm336_vm0, %v2263_v32  ;;  %v2265_v35 = vld [vmem:[%s3281_s1 + $0x10] sm:$0xff]   ;;  %v2267_v38 = vld [vmem:[%s3281_s1 + $0x48] sm:$0xff]   ;;  %v684_v8 = vlaneseq  ;;  %s2336_s20 = smov [#allocation2]  }
  0x27   :  { %2220 = vmatprep.subr.msk.bf16.mxu1 %vm336_vm0, %v2264_v34  ;;  %v2266_v36 = vld [vmem:[%s3281_s1 + $0x90] sm:$0xff]   ;;  %v368_v37 = vsel %vm336_vm0, %v2265_v35, 0  ;;  %v2268_v40 = vld [vmem:[%s3281_s1 + $0xc8] sm:$0xff]   ;;  %v2271_v44 = vld [vmem:[%s3281_s1 + $0x40] sm:$0xff]  }
  0x28   :  { %v416_v39 = vsel %vm336_vm0, %v2266_v36, 0  ;;  %v2269_v41 = vld [vmem:[%s3281_s1 + $0x8] sm:$0xff]   ;;  %v2272_v46 = vld [vmem:[%s3281_s1 + $0xc0] sm:$0xff]   ;;  %v25_v51 = vld [vmem:[%s3280_s0 + $0x10] sm:$0xff]  ;;  %v2581_v9 = vshrl.u32 %v684_v8, 7  ;;  %v2589_v14 = vand.u32 127, %v684_v8 }
  0x29   :  { %v2270_v42 = vld [vmem:[%s3281_s1 + $0x88] sm:$0xff]   ;;  %v365_v43 = vsel %vm336_vm0, %v2269_v41, 0  ;;  %v2273_v47 = vld [vmem:[%s3281_s1] sm:$0xff]   ;;  %v26_v52 = vld [vmem:[%s3280_s0 + $0x18] sm:$0xff] }
  0x2a   :  { %v413_v45 = vsel %vm336_vm0, %v2270_v42, 0  ;;  %v2274_v48 = vld [vmem:[%s3281_s1 + $0x80] sm:$0xff]   ;;  %v362_v49 = vsel %vm336_vm0, %v2273_v47, 0  ;;  %v169_v53 = vpack.c.bf16 %v26_v52, %v25_v51  ;;  %v28_v55 = vld [vmem:[%s3280_s0 + $0x28] sm:$0xff]  ;;  %v29_v57 = vld [vmem:[%s3280_s0 + $0x30] sm:$0xff]  ;;  %v686_v10 = vsub.s32 0, %v2581_v9 }
  0x2b   :  { %v410_v50 = vsel %vm336_vm0, %v2274_v48, 0  ;;  %v27_v54 = vld [vmem:[%s3280_s0 + $0x20] sm:$0xff]  ;;  %v30_v58 = vld [vmem:[%s3280_s0 + $0x38] sm:$0xff]  ;;  %v32_v61 = vld [vmem:[%s3280_s0 + $0x48] sm:$0xff]  ;;  %v694_v11 = vsub.s32 2, %v2581_v9  ;;  %v690_v12 = vsub.s32 1, %v2581_v9 }
  0x2c   :  { %v170_v56 = vpack.c.bf16 %v28_v55, %v27_v54  ;;  %v171_v59 = vpack.c.bf16 %v30_v58, %v29_v57  ;;  %v31_v60 = vld [vmem:[%s3280_s0 + $0x40] sm:$0xff]  ;;  %v33_v63 = vld [vmem:[%s3280_s0 + $0x50] sm:$0xff]  ;;  %v34_v0 = vld [vmem:[%s3280_s0 + $0x58] sm:$0xff]  ;;  %v698_v18 = vsub.s32 3, %v2581_v9  ;;  %v2599_v22 = vadd.s32 128, %v2589_v14  ;;  %s1783_s1 = sshll.u32 %s2336_s20, 4  ;;  %s1784_s1 = int_to_ptr.vmem [resolvable:$true] %s1783_s1 }
  0x2d   :  { %1994 = vmatpush3.bf16.xpose.msra.mxu0 %v368_v37  ;;  %v172_v62 = vpack.c.bf16 %v32_v61, %v31_v60  ;;  %v173_v1 = vpack.c.bf16 %v34_v0, %v33_v63  ;;  %v35_v2 = vld [vmem:[%s3280_s0 + $0x60] sm:$0xff]  ;;  %v36_v3 = vld [vmem:[%s3280_s0 + $0x68] sm:$0xff]  ;;  %v37_v5 = vld [vmem:[%s3280_s0 + $0x70] sm:$0xff]  ;;  %v2607_v29 = vadd.s32 256, %v2589_v14  ;;  %v2612_v34 = vadd.s32 384, %v2589_v14  ;;  %s2291_s24 = scalar_lea.vmem %s1784_s1, 16  ;;  %p2296_p1 = scmp.lt.s32.totalorder %s1784_s1, %s1784_s1 }
  0x2e   :  { %2026 = vmatpush3.bf16.xpose.msra.mxu1 %v416_v39  ;;  %2213 = vmatprep.subr.msk.bf16.mxu0 %vm336_vm0, %v2267_v38  ;;  %v174_v4 = vpack.c.bf16 %v36_v3, %v35_v2  ;;  %v38_v6 = vld [vmem:[%s3280_s0 + $0x78] sm:$0xff]  ;;  %v167_v13 = vld [vmem:[%s3283_s3] sm:$0xf]  ;;  %p2292_p0 = scmp.ne.s32.totalorder %s1784_s1, %s2291_s24  ;;  %s2295_s25 = scalar_lea.vmem %s1784_s1, 32 }
  0x2f   :  { %2221 = vmatprep.subr.msk.bf16.mxu1 %vm336_vm0, %v2268_v40  ;;  %v175_v7 = vpack.c.bf16 %v38_v6, %v37_v5  ;;  %v2591_v15 = vrot.slane %v167_v13, %v686_v10  ;;  %v2593_v16 = vrot.slane %v167_v13, %v694_v11  ;;  %v2595_v17 = vrot.slane %v167_v13, %v690_v12  ;;  %p2297_p2 = scmp.lt.s32.totalorder %s2295_s25, %s2291_s24 }
  0x30   :  { %v2604_v27 = vrot.slane %v167_v13, %v698_v18 }
  0x31   :  { %p2298_p3 = por %p2297_p2, %p2296_p1 }
  0x33   :  { %p2299_p4 = pnand %p2298_p3, %p2292_p0 }
  0x35   :  { %1996 = vmatpush3.bf16.xpose.msra.mxu0 %v365_v43 }
  0x36   :  { %2028 = vmatpush3.bf16.xpose.msra.mxu1 %v413_v45  ;;  %2214 = vmatprep.subr.msk.bf16.mxu0 %vm336_vm0, %v2271_v44 }
  0x37   :  { %2222 = vmatprep.subr.msk.bf16.mxu1 %vm336_vm0, %v2272_v46 }
  0x3d   :  { %1998 = vmatpush3.bf16.xpose.msra.mxu0 %v362_v49 }
  0x3e   :  { %2030 = vmatpush3.bf16.xpose.msra.mxu1 %v410_v50 }
  0x44   :  { %2000 = vmatmul.mubr.msk.bf16.vlgmr.msra.gmra.mxu0 %vm336_vm0, %v168_v30 }
  0x45   :  { %2032 = vmatmul.mubr.msk.bf16.vlgmr.msra.gmra.mxu1 %vm336_vm0, %v168_v30  ;;  %2001 = vmatprep.mubr.msk.bf16.mxu0 %vm336_vm0, %v169_v53 }
  0x46   :  { %2033 = vmatprep.mubr.msk.bf16.mxu1 %vm336_vm0, %v169_v53 }
  0x4c   :  { %2002 = vmatmul.mubr.msk.bf16.gmra.mxu0 %vm336_vm0, %v169_v53 }
  0x4d   :  { %2034 = vmatmul.mubr.msk.bf16.gmra.mxu1 %vm336_vm0, %v169_v53  ;;  %2003 = vmatprep.mubr.msk.bf16.mxu0 %vm336_vm0, %v170_v56 }
  0x4e   :  { %2035 = vmatprep.mubr.msk.bf16.mxu1 %vm336_vm0, %v170_v56 }
  0x54   :  { %2004 = vmatmul.mubr.msk.bf16.gmra.mxu0 %vm336_vm0, %v170_v56 }
  0x55   :  { %2036 = vmatmul.mubr.msk.bf16.gmra.mxu1 %vm336_vm0, %v170_v56  ;;  %2005 = vmatprep.mubr.msk.bf16.mxu0 %vm336_vm0, %v171_v59 }
  0x56   :  { %2037 = vmatprep.mubr.msk.bf16.mxu1 %vm336_vm0, %v171_v59 }
  0x5c   :  { %2006 = vmatmul.mubr.msk.bf16.gmra.mxu0 %vm336_vm0, %v171_v59 }
  0x5d   :  { %2038 = vmatmul.mubr.msk.bf16.gmra.mxu1 %vm336_vm0, %v171_v59  ;;  %2007 = vmatprep.mubr.msk.bf16.mxu0 %vm336_vm0, %v172_v62 }
  0x5e   :  { %2039 = vmatprep.mubr.msk.bf16.mxu1 %vm336_vm0, %v172_v62 }
  0x64   :  { %2008 = vmatmul.mubr.msk.bf16.gmra.mxu0 %vm336_vm0, %v172_v62 }
  0x65   :  { %2040 = vmatmul.mubr.msk.bf16.gmra.mxu1 %vm336_vm0, %v172_v62  ;;  %2009 = vmatprep.mubr.msk.bf16.mxu0 %vm336_vm0, %v173_v1 }
  0x66   :  { %2041 = vmatprep.mubr.msk.bf16.mxu1 %vm336_vm0, %v173_v1 }
  0x6c   :  { %2010 = vmatmul.mubr.msk.bf16.gmra.mxu0 %vm336_vm0, %v173_v1 }
  0x6d   :  { %2042 = vmatmul.mubr.msk.bf16.gmra.mxu1 %vm336_vm0, %v173_v1  ;;  %2011 = vmatprep.mubr.msk.bf16.mxu0 %vm336_vm0, %v174_v4 }
  0x6e   :  { %2043 = vmatprep.mubr.msk.bf16.mxu1 %vm336_vm0, %v174_v4 }
  0x74   :  { %2012 = vmatmul.mubr.msk.bf16.gmra.mxu0 %vm336_vm0, %v174_v4 }
  0x75   :  { %2044 = vmatmul.mubr.msk.bf16.gmra.mxu1 %vm336_vm0, %v174_v4  ;;  %2013 = vmatprep.mubr.msk.bf16.mxu0 %vm336_vm0, %v175_v7 }
  0x76   :  { %2045 = vmatprep.mubr.msk.bf16.mxu1 %vm336_vm0, %v175_v7 }
  0x7c   :  { %2014 = vmatmul.mubr.msk.bf16.gmra.mxu0 %vm336_vm0, %v175_v7 }
  0x7d   :  { %2046 = vmatmul.mubr.msk.bf16.gmra.mxu1 %vm336_vm0, %v175_v7 }
 0x104   :  { %v491_v19 = vpop.f32.mrf.mxu0 }
 0x105   :  { %v604_v20 = vpop.f32.mrf.mxu1  ;;  %v704_v23 = vsub.f32 %v2591_v15, %v491_v19 }
 0x106   :  { %v493_v21 = vpop.f32.mrf.mxu0  ;;  %v706_v24 = vsub.f32 %v2593_v16, %v604_v20 }
 0x107   :  { %v705_v25 = vsub.f32 %v2595_v17, %v493_v21  ;;  %v606_v26 = vpop.f32.mrf.mxu1 }
 0x108   :  { %v495_v28 = vpop.f32.mrf.mxu0  ;;  %v707_v35 = vsub.f32 %v2604_v27, %v606_v26 }
 0x109   :  { %vm771_vm1 = vcmp.le.f32.partialorder %v704_v23, %v705_v25  ;;  %v608_v30 = vpop.f32.mrf.mxu1  ;;  %v708_v36 = vsub.f32 %v2591_v15, %v495_v28 }
 0x10a   :  { %v773_v31 = vsel %vm771_vm1, %v2589_v14, %v2599_v22  ;;  %v497_v32 = vpop.f32.mrf.mxu0  ;;  %v772_v33 = vsel %vm771_vm1, %v704_v23, %v705_v25  ;;  %v710_v42 = vsub.f32 %v2593_v16, %v608_v30 }
 0x10b   :  { %v709_v37 = vsub.f32 %v2595_v17, %v497_v32  ;;  %v610_v38 = vpop.f32.mrf.mxu1  ;;  %vm775_vm2 = vcmp.le.f32.partialorder %v772_v33, %v706_v24 }
 0x10c   :  { %v501_v39 = vpop.f32.mrf.mxu0  ;;  %v776_v40 = vsel %vm775_vm2, %v772_v33, %v706_v24  ;;  %v777_v41 = vsel %vm775_vm2, %v773_v31, %v2607_v29  ;;  %v711_v43 = vsub.f32 %v2604_v27, %v610_v38 }
 0x10d   :  { %vm787_vm3 = vcmp.le.f32.partialorder %v708_v36, %v709_v37  ;;  %v614_v44 = vpop.f32.mrf.mxu1  ;;  %vm779_vm4 = vcmp.le.f32.partialorder %v776_v40, %v707_v35  ;;  %v712_v46 = vsub.f32 %v2591_v15, %v501_v39 }
 0x10e   :  { %v789_v45 = vsel %vm787_vm3, %v2589_v14, %v2599_v22  ;;  %v503_v47 = vpop.f32.mrf.mxu0  ;;  %v780_v48 = vsel %vm779_vm4, %v776_v40, %v707_v35  ;;  %v788_v49 = vsel %vm787_vm3, %v708_v36, %v709_v37  ;;  %v714_v50 = vsub.f32 %v2593_v16, %v614_v44 }
 0x10f   :  { %v713_v51 = vsub.f32 %v2595_v17, %v503_v47  ;;  %v616_v52 = vpop.f32.mrf.mxu1  ;;  %782 = vmin.index.xlane.f32.xlu0 %v780_v48  ;;  %vm790_vm5 = vcmp.le.f32.partialorder %v788_v49, %v710_v42  ;;  %v2626_v53 = vsel %vm779_vm4, %v777_v41, %v2612_v34 }
 0x110   :  { %v505_v54 = vpop.f32.mrf.mxu0  ;;  %v791_v55 = vsel %vm790_vm5, %v788_v49, %v710_v42  ;;  %v792_v56 = vsel %vm790_vm5, %v789_v45, %v2607_v29  ;;  %v715_v60 = vsub.f32 %v2604_v27, %v616_v52 }
 0x111   :  { %vm801_vm6 = vcmp.le.f32.partialorder %v712_v46, %v713_v51  ;;  %v618_v57 = vpop.f32.mrf.mxu1  ;;  %vm793_vm7 = vcmp.le.f32.partialorder %v791_v55, %v711_v43  ;;  %v716_v63 = vsub.f32 %v2591_v15, %v505_v54 }
 0x112   :  { %v802_v58 = vsel %vm801_vm6, %v712_v46, %v713_v51  ;;  %v803_v59 = vsel %vm801_vm6, %v2589_v14, %v2599_v22  ;;  %v507_v61 = vpop.f32.mrf.mxu0  ;;  %v794_v62 = vsel %vm793_vm7, %v791_v55, %v711_v43  ;;  %v2635_v2 = vsel %vm793_vm7, %v792_v56, %v2612_v34 }
 0x113   :  { %vm804_vm8 = vcmp.le.f32.partialorder %v802_v58, %v714_v50  ;;  %v717_v0 = vsub.f32 %v2595_v17, %v507_v61  ;;  %v620_v1 = vpop.f32.mrf.mxu1  ;;  %796 = vmin.index.xlane.f32.xlu1 %v794_v62  ;;  %v718_v6 = vsub.f32 %v2593_v16, %v618_v57 }
 0x114   :  { %v805_v3 = vsel %vm804_vm8, %v802_v58, %v714_v50  ;;  %v511_v4 = vpop.f32.mrf.mxu0  ;;  %v806_v5 = vsel %vm804_vm8, %v803_v59, %v2607_v29  ;;  %v719_v12 = vsub.f32 %v2604_v27, %v620_v1 }
 0x115   :  { %vm807_vm9 = vcmp.le.f32.partialorder %v805_v3, %v715_v60  ;;  %vm815_vm10 = vcmp.le.f32.partialorder %v716_v63, %v717_v0  ;;  %v720_v7 = vsub.f32 %v2591_v15, %v511_v4  ;;  %v624_v8 = vpop.f32.mrf.mxu1 }
 0x116   :  { %v816_v10 = vsel %vm815_vm10, %v716_v63, %v717_v0  ;;  %v817_v11 = vsel %vm815_vm10, %v2589_v14, %v2599_v22  ;;  %v513_v13 = vpop.f32.mrf.mxu0  ;;  %v808_v18 = vsel %vm807_vm9, %v805_v3, %v715_v60  ;;  %v722_v20 = vsub.f32 %v2593_v16, %v624_v8 }
 0x117   :  { %vm818_vm11 = vcmp.le.f32.partialorder %v816_v10, %v718_v6  ;;  %v721_v19 = vsub.f32 %v2595_v17, %v513_v13  ;;  %810 = vmin.index.xlane.f32.xlu1 %v808_v18  ;;  %v626_v21 = vpop.f32.mrf.mxu1  ;;  %v2646_v23 = vsel %vm807_vm9, %v806_v5, %v2612_v34 }
 0x118   :  { %v819_v24 = vsel %vm818_vm11, %v816_v10, %v718_v6  ;;  %v515_v25 = vpop.f32.mrf.mxu0  ;;  %v820_v26 = vsel %vm818_vm11, %v817_v11, %v2607_v29  ;;  %v723_v30 = vsub.f32 %v2604_v27, %v626_v21 }
 0x119   :  { %vm821_vm12 = vcmp.le.f32.partialorder %v819_v24, %v719_v12  ;;  %vm829_vm13 = vcmp.le.f32.partialorder %v720_v7, %v721_v19  ;;  %v724_v28 = vsub.f32 %v2591_v15, %v515_v25  ;;  %v628_v31 = vpop.f32.mrf.mxu1 }
 0x11a   :  { %v831_v32 = vsel %vm829_vm13, %v2589_v14, %v2599_v22  ;;  %v830_v33 = vsel %vm829_vm13, %v720_v7, %v721_v19  ;;  %v517_v35 = vpop.f32.mrf.mxu0  ;;  %v822_v36 = vsel %vm821_vm12, %v819_v24, %v719_v12  ;;  %v726_v38 = vsub.f32 %v2593_v16, %v628_v31 }
 0x11b   :  { %vm832_vm14 = vcmp.le.f32.partialorder %v830_v33, %v722_v20  ;;  %v725_v37 = vsub.f32 %v2595_v17, %v517_v35  ;;  %824 = vmin.index.xlane.f32.xlu0 %v822_v36  ;;  %v630_v39 = vpop.f32.mrf.mxu1  ;;  %v2656_v40 = vsel %vm821_vm12, %v820_v26, %v2612_v34 }
 0x11c   :  { %v833_v41 = vsel %vm832_vm14, %v830_v33, %v722_v20  ;;  %v521_v42 = vpop.f32.mrf.mxu0  ;;  %v834_v43 = vsel %vm832_vm14, %v831_v32, %v2607_v29  ;;  %v727_v44 = vsub.f32 %v2604_v27, %v630_v39 }
 0x11d   :  { %vm843_vm15 = vcmp.le.f32.partialorder %v724_v28, %v725_v37  ;;  %vm835_vm1 = vcmp.le.f32.partialorder %v833_v41, %v723_v30  ;;  %v728_v45 = vsub.f32 %v2591_v15, %v521_v42  ;;  %v634_v46 = vpop.f32.mrf.mxu1 }
 0x11e   :  { %v845_v47 = vsel %vm843_vm15, %v2589_v14, %v2599_v22  ;;  %v844_v48 = vsel %vm843_vm15, %v724_v28, %v725_v37  ;;  %v836_v49 = vsel %vm835_vm1, %v833_v41, %v723_v30  ;;  %v523_v50 = vpop.f32.mrf.mxu0  ;;  %v730_v52 = vsub.f32 %v2593_v16, %v634_v46 }
 0x11f   :  { %vm846_vm2 = vcmp.le.f32.partialorder %v844_v48, %v726_v38  ;;  %838 = vmin.index.xlane.f32.xlu1 %v836_v49  ;;  %v729_v51 = vsub.f32 %v2595_v17, %v523_v50  ;;  %v636_v54 = vpop.f32.mrf.mxu1  ;;  %v2666_v55 = vsel %vm835_vm1, %v834_v43, %v2612_v34 }
 0x120   :  { %v847_v56 = vsel %vm846_vm2, %v844_v48, %v726_v38  ;;  %v525_v57 = vpop.f32.mrf.mxu0  ;;  %v848_v58 = vsel %vm846_vm2, %v845_v47, %v2607_v29  ;;  %v731_v60 = vsub.f32 %v2604_v27, %v636_v54 }
 0x121   :  { %vm849_vm3 = vcmp.le.f32.partialorder %v847_v56, %v727_v44  ;;  %vm857_vm4 = vcmp.le.f32.partialorder %v728_v45, %v729_v51  ;;  %v732_v59 = vsub.f32 %v2591_v15, %v525_v57  ;;  %v638_v61 = vpop.f32.mrf.mxu1 }
 0x122   :  { %v850_v62 = vsel %vm849_vm3, %v847_v56, %v727_v44  ;;  %v859_v63 = vsel %vm857_vm4, %v2589_v14, %v2599_v22  ;;  %v858_v0 = vsel %vm857_vm4, %v728_v45, %v729_v51  ;;  %v527_v1 = vpop.f32.mrf.mxu0  ;;  %v734_v4 = vsub.f32 %v2593_v16, %v638_v61 }
 0x123   :  { %852 = vmin.index.xlane.f32.xlu1 %v850_v62  ;;  %vm860_vm5 = vcmp.le.f32.partialorder %v858_v0, %v730_v52  ;;  %v733_v3 = vsub.f32 %v2595_v17, %v527_v1  ;;  %v640_v5 = vpop.f32.mrf.mxu1  ;;  %v2676_v6 = vsel %vm849_vm3, %v848_v58, %v2612_v34 }
 0x124   :  { %v861_v7 = vsel %vm860_vm5, %v858_v0, %v730_v52  ;;  %v531_v8 = vpop.f32.mrf.mxu0  ;;  %v862_v10 = vsel %vm860_vm5, %v859_v63, %v2607_v29  ;;  %v735_v11 = vsub.f32 %v2604_v27, %v640_v5 }
 0x125   :  { %vm871_vm6 = vcmp.le.f32.partialorder %v732_v59, %v733_v3  ;;  %vm863_vm7 = vcmp.le.f32.partialorder %v861_v7, %v731_v60  ;;  %v736_v12 = vsub.f32 %v2591_v15, %v531_v8  ;;  %v644_v13 = vpop.f32.mrf.mxu1 }
 0x126   :  { %v873_v18 = vsel %vm871_vm6, %v2589_v14, %v2599_v22  ;;  %v872_v19 = vsel %vm871_vm6, %v732_v59, %v733_v3  ;;  %v533_v20 = vpop.f32.mrf.mxu0  ;;  %v864_v21 = vsel %vm863_vm7, %v861_v7, %v731_v60  ;;  %v738_v25 = vsub.f32 %v2593_v16, %v644_v13 }
 0x127   :  { %vm874_vm8 = vcmp.le.f32.partialorder %v872_v19, %v734_v4  ;;  %v737_v24 = vsub.f32 %v2595_v17, %v533_v20  ;;  %866 = vmin.index.xlane.f32.xlu0 %v864_v21  ;;  %v646_v26 = vpop.f32.mrf.mxu1  ;;  %v2686_v28 = vsel %vm863_vm7, %v862_v10, %v2612_v34 }
 0x128   :  { %v875_v30 = vsel %vm874_vm8, %v872_v19, %v734_v4  ;;  %v535_v31 = vpop.f32.mrf.mxu0  ;;  %v876_v32 = vsel %vm874_vm8, %v873_v18, %v2607_v29  ;;  %v739_v33 = vsub.f32 %v2604_v27, %v646_v26 }
 0x129   :  { %vm877_vm9 = vcmp.le.f32.partialorder %v875_v30, %v735_v11  ;;  %vm885_vm10 = vcmp.le.f32.partialorder %v736_v12, %v737_v24  ;;  %v740_v35 = vsub.f32 %v2591_v15, %v535_v31  ;;  %v648_v36 = vpop.f32.mrf.mxu1 }
 0x12a   :  { %v878_v37 = vsel %vm877_vm9, %v875_v30, %v735_v11  ;;  %v887_v38 = vsel %vm885_vm10, %v2589_v14, %v2599_v22  ;;  %v886_v39 = vsel %vm885_vm10, %v736_v12, %v737_v24  ;;  %v537_v41 = vpop.f32.mrf.mxu0  ;;  %v742_v43 = vsub.f32 %v2593_v16, %v648_v36 }
 0x12b   :  { %880 = vmin.index.xlane.f32.xlu1 %v878_v37  ;;  %vm888_vm11 = vcmp.le.f32.partialorder %v886_v39, %v738_v25  ;;  %v741_v42 = vsub.f32 %v2595_v17, %v537_v41  ;;  %v650_v44 = vpop.f32.mrf.mxu1  ;;  %v2696_v45 = vsel %vm877_vm9, %v876_v32, %v2612_v34 }
 0x12c   :  { %v889_v46 = vsel %vm888_vm11, %v886_v39, %v738_v25  ;;  %v541_v47 = vpop.f32.mrf.mxu0  ;;  %v890_v48 = vsel %vm888_vm11, %v887_v38, %v2607_v29  ;;  %v743_v49 = vsub.f32 %v2604_v27, %v650_v44 }
 0x12d   :  { %vm891_vm12 = vcmp.le.f32.partialorder %v889_v46, %v739_v33  ;;  %vm899_vm13 = vcmp.le.f32.partialorder %v740_v35, %v741_v42  ;;  %v744_v50 = vsub.f32 %v2591_v15, %v541_v47  ;;  %v654_v51 = vpop.f32.mrf.mxu1 }
 0x12e   :  { %v901_v52 = vsel %vm899_vm13, %v2589_v14, %v2599_v22  ;;  %v892_v54 = vsel %vm891_vm12, %v889_v46, %v739_v33  ;;  %v900_v56 = vsel %vm899_vm13, %v740_v35, %v741_v42  ;;  %v543_v57 = vpop.f32.mrf.mxu0  ;;  %v746_v59 = vsub.f32 %v2593_v16, %v654_v51 }
 0x12f   :  { %894 = vmin.index.xlane.f32.xlu0 %v892_v54  ;;  %vm902_vm14 = vcmp.le.f32.partialorder %v900_v56, %v742_v43  ;;  %v745_v58 = vsub.f32 %v2595_v17, %v543_v57  ;;  %v656_v60 = vpop.f32.mrf.mxu1  ;;  %v2706_v61 = vsel %vm891_vm12, %v890_v48, %v2612_v34 }
 0x130   :  { %v903_v62 = vsel %vm902_vm14, %v900_v56, %v742_v43  ;;  %v545_v63 = vpop.f32.mrf.mxu0  ;;  %v904_v0 = vsel %vm902_vm14, %v901_v52, %v2607_v29  ;;  %v747_v1 = vsub.f32 %v2604_v27, %v656_v60 }
 0x131   :  { %vm905_vm15 = vcmp.le.f32.partialorder %v903_v62, %v743_v49  ;;  %vm913_vm1 = vcmp.le.f32.partialorder %v744_v50, %v745_v58  ;;  %v748_v3 = vsub.f32 %v2591_v15, %v545_v63  ;;  %v658_v4 = vpop.f32.mrf.mxu1 }
 0x132   :  { %v915_v5 = vsel %vm913_vm1, %v2589_v14, %v2599_v22  ;;  %v906_v7 = vsel %vm905_vm15, %v903_v62, %v743_v49  ;;  %v914_v8 = vsel %vm913_vm1, %v744_v50, %v745_v58  ;;  %v547_v10 = vpop.f32.mrf.mxu0  ;;  %v750_v12 = vsub.f32 %v2593_v16, %v658_v4 }
 0x133   :  { %908 = vmin.index.xlane.f32.xlu0 %v906_v7  ;;  %vm916_vm2 = vcmp.le.f32.partialorder %v914_v8, %v746_v59  ;;  %v749_v11 = vsub.f32 %v2595_v17, %v547_v10  ;;  %v660_v13 = vpop.f32.mrf.mxu1  ;;  %v2716_v18 = vsel %vm905_vm15, %v904_v0, %v2612_v34 }
 0x134   :  { %v917_v19 = vsel %vm916_vm2, %v914_v8, %v746_v59  ;;  %v551_v20 = vpop.f32.mrf.mxu0  ;;  %v918_v21 = vsel %vm916_vm2, %v915_v5, %v2607_v29  ;;  %v751_v24 = vsub.f32 %v2604_v27, %v660_v13 }
 0x135   :  { %vm919_vm3 = vcmp.le.f32.partialorder %v917_v19, %v747_v1  ;;  %vm927_vm4 = vcmp.le.f32.partialorder %v748_v3, %v749_v11  ;;  %v752_v25 = vsub.f32 %v2591_v15, %v551_v20  ;;  %v664_v26 = vpop.f32.mrf.mxu1 }
 0x136   :  { %v929_v30 = vsel %vm927_vm4, %v2589_v14, %v2599_v22  ;;  %v920_v31 = vsel %vm919_vm3, %v917_v19, %v747_v1  ;;  %v928_v32 = vsel %vm927_vm4, %v748_v3, %v749_v11  ;;  %v553_v33 = vpop.f32.mrf.mxu0  ;;  %v754_v36 = vsub.f32 %v2593_v16, %v664_v26 }
 0x137   :  { %922 = vmin.index.xlane.f32.xlu1 %v920_v31  ;;  %vm930_vm5 = vcmp.le.f32.partialorder %v928_v32, %v750_v12  ;;  %v753_v35 = vsub.f32 %v2595_v17, %v553_v33  ;;  %v666_v37 = vpop.f32.mrf.mxu1  ;;  %v2726_v38 = vsel %vm919_vm3, %v918_v21, %v2612_v34 }
 0x138   :  { %v931_v39 = vsel %vm930_vm5, %v928_v32, %v750_v12  ;;  %v555_v41 = vpop.f32.mrf.mxu0  ;;  %v932_v42 = vsel %vm930_vm5, %v929_v30, %v2607_v29  ;;  %v755_v43 = vsub.f32 %v2604_v27, %v666_v37 }
 0x139   :  { %vm933_vm6 = vcmp.le.f32.partialorder %v931_v39, %v751_v24  ;;  %vm941_vm7 = vcmp.le.f32.partialorder %v752_v25, %v753_v35  ;;  %v756_v44 = vsub.f32 %v2591_v15, %v555_v41  ;;  %v668_v46 = vpop.f32.mrf.mxu1 }
 0x13a   :  { %v943_v47 = vsel %vm941_vm7, %v2589_v14, %v2599_v22  ;;  %v934_v48 = vsel %vm933_vm6, %v931_v39, %v751_v24  ;;  %v942_v49 = vsel %vm941_vm7, %v752_v25, %v753_v35  ;;  %v557_v50 = vpop.f32.mrf.mxu0  ;;  %v758_v52 = vsub.f32 %v2593_v16, %v668_v46  ;;  %v134_v46 = vld [vmem:[%s3282_s2 + $0xf8] sm:$0xff] }
 0x13b   :  { %936 = vmin.index.xlane.f32.xlu0 %v934_v48  ;;  %vm944_vm8 = vcmp.le.f32.partialorder %v942_v49, %v754_v36  ;;  %v757_v51 = vsub.f32 %v2595_v17, %v557_v50  ;;  %v670_v54 = vpop.f32.mrf.mxu1  ;;  %v2736_v56 = vsel %vm933_vm6, %v932_v42, %v2612_v34  ;;  %v118_v48 = vld [vmem:[%s3282_s2 + $0x78] sm:$0xff]  ;;  %2047 = vmatprep.subr.mxu0 %v134_v46  ;;  %v133_v50 = vld [vmem:[%s3282_s2 + $0xf0] sm:$0xff]  ;;  %v156_v46 = vld [vmem:[%s3282_s2 + $0x1a8] sm:$0xff] }
 0x13c   :  { %v945_v57 = vsel %vm944_vm8, %v942_v49, %v754_v36  ;;  %v561_v58 = vpop.f32.mrf.mxu0  ;;  %v946_v59 = vsel %vm944_vm8, %v943_v47, %v2607_v29  ;;  %v759_v60 = vsub.f32 %v2604_v27, %v670_v54  ;;  %v166_v47 = vld [vmem:[%s3282_s2 + $0x1f8] sm:$0xff]  ;;  %2048 = vmatpush3.msra.mxu0 %v118_v48  ;;  %v149_v54 = vld [vmem:[%s3282_s2 + $0x170] sm:$0xff]  ;;  %v140_v48 = vld [vmem:[%s3282_s2 + $0x128] sm:$0xff]  ;;  %vm1006_vm8 = vcmask 130112  }
 0x13d   :  { %vm947_vm9 = vcmp.le.f32.partialorder %v945_v57, %v755_v43  ;;  %vm955_vm10 = vcmp.le.f32.partialorder %v756_v44, %v757_v51  ;;  %v760_v62 = vsub.f32 %v2591_v15, %v561_v58  ;;  %v674_v63 = vpop.f32.mrf.mxu1  ;;  %2127 = vmatprep.subr.mxu1 %v166_v47  ;;  %v150_v49 = vld [vmem:[%s3282_s2 + $0x178] sm:$0xff]  ;;  %2049 = vmatprep.subr.mxu0 %v133_v50  ;;  %v164_v58 = vld [vmem:[%s3282_s2 + $0x1e8] sm:$0xff]  ;;  %v155_v50 = vld [vmem:[%s3282_s2 + $0x1a0] sm:$0xff] }
 0x13e   :  { %v957_v0 = vsel %vm955_vm10, %v2589_v14, %v2599_v22  ;;  %v956_v1 = vsel %vm955_vm10, %v756_v44, %v757_v51  ;;  %v948_v3 = vsel %vm947_vm9, %v945_v57, %v755_v43  ;;  %v563_v4 = vpop.f32.mrf.mxu0  ;;  %v762_v7 = vsub.f32 %v2593_v16, %v674_v63  ;;  %v165_v51 = vld [vmem:[%s3282_s2 + $0x1f0] sm:$0xff]  ;;  %2128 = vmatpush3.msra.mxu1 %v150_v49  ;;  %v132_v57 = vld [vmem:[%s3282_s2 + $0xe8] sm:$0xff]  ;;  %v163_v63 = vld [vmem:[%s3282_s2 + $0x1e0] sm:$0xff] }
 0x13f   :  { %vm958_vm11 = vcmp.le.f32.partialorder %v956_v1, %v758_v52  ;;  %950 = vmin.index.xlane.f32.xlu1 %v948_v3  ;;  %v761_v5 = vsub.f32 %v2595_v17, %v563_v4  ;;  %v676_v8 = vpop.f32.mrf.mxu1  ;;  %v2746_v10 = vsel %vm947_vm9, %v946_v59, %v2612_v34  ;;  %2129 = vmatprep.subr.mxu1 %v165_v51  ;;  %v116_v59 = vld [vmem:[%s3282_s2 + $0x68] sm:$0xff]  ;;  %v130_v3 = vld [vmem:[%s3282_s2 + $0xd8] sm:$0xff]  ;;  %v123_v49 = vld [vmem:[%s3282_s2 + $0xa0] sm:$0xff] }
 0x140   :  { %v959_v11 = vsel %vm958_vm11, %v956_v1, %v758_v52  ;;  %v565_v12 = vpop.f32.mrf.mxu0  ;;  %v960_v13 = vsel %vm958_vm11, %v957_v0, %v2607_v29  ;;  %v763_v20 = vsub.f32 %v2604_v27, %v676_v8  ;;  %v117_v52 = vld [vmem:[%s3282_s2 + $0x70] sm:$0xff]  ;;  %2130 = vmatpush3.msra.mxu1 %v149_v54  ;;  %v115_v0 = vld [vmem:[%s3282_s2 + $0x60] sm:$0xff]  ;;  %v162_v4 = vld [vmem:[%s3282_s2 + $0x1d8] sm:$0xff] }
 0x141   :  { %vm961_vm12 = vcmp.le.f32.partialorder %v959_v11, %v759_v60  ;;  %vm969_vm13 = vcmp.le.f32.partialorder %v760_v62, %v761_v5  ;;  %v764_v19 = vsub.f32 %v2591_v15, %v565_v12  ;;  %v678_v21 = vpop.f32.mrf.mxu1  ;;  %2050 = vmatpush3.msra.mxu0 %v117_v52  ;;  %2131 = vmatprep.subr.mxu1 %v164_v58  ;;  %v147_v1 = vld [vmem:[%s3282_s2 + $0x160] sm:$0xff]  ;;  %v129_v8 = vld [vmem:[%s3282_s2 + $0xd0] sm:$0xff]  ;;  %v108_v47 = vld [vmem:[%s3282_s2 + $0x28] sm:$0xff] }
 0x142   :  { %v962_v24 = vsel %vm961_vm12, %v959_v11, %v759_v60  ;;  %v970_v25 = vsel %vm969_vm13, %v760_v62, %v761_v5  ;;  %v567_v26 = vpop.f32.mrf.mxu0  ;;  %v766_v31 = vsub.f32 %v2593_v16, %v678_v21  ;;  %v2754_v33 = vsel %vm961_vm12, %v960_v13, %v2612_v34  ;;  %2051 = vmatprep.subr.mxu0 %v132_v57  ;;  %v148_v60 = vld [vmem:[%s3282_s2 + $0x168] sm:$0xff]  ;;  %v131_v62 = vld [vmem:[%s3282_s2 + $0xe0] sm:$0xff]  ;;  %v114_v5 = vld [vmem:[%s3282_s2 + $0x58] sm:$0xff] }
 0x143   :  { %964 = vmin.index.xlane.f32.xlu0 %v962_v24  ;;  %vm972_vm14 = vcmp.le.f32.partialorder %v970_v25, %v762_v7  ;;  %v765_v30 = vsub.f32 %v2595_v17, %v567_v26  ;;  %v680_v32 = vpop.f32.mrf.mxu1  ;;  %v971_v15 = vsel %vm969_vm13, %v2589_v14, %v2599_v22  ;;  %2052 = vmatpush3.msra.mxu0 %v116_v59  ;;  %v161_v11 = vld [vmem:[%s3282_s2 + $0x1d0] sm:$0xff]  ;;  %v112_v21 = vld [vmem:[%s3282_s2 + $0x48] sm:$0xff]  ;;  %v159_v26 = vld [vmem:[%s3282_s2 + $0x1c0] sm:$0xff]  ;;  %vm1013_vm13 = vcmask 195712  }
 0x144   :  { %v973_v35 = vsel %vm972_vm14, %v970_v25, %v762_v7  ;;  %v767_v36 = vsub.f32 %v2604_v27, %v680_v32  ;;  %v974_v16 = vsel %vm972_vm14, %v971_v15, %v2607_v29  ;;  %2132 = vmatpush3.msra.mxu1 %v148_v60  ;;  %2053 = vmatprep.subr.mxu0 %v131_v62  ;;  %v146_v7 = vld [vmem:[%s3282_s2 + $0x158] sm:$0xff]  ;;  %v113_v12 = vld [vmem:[%s3282_s2 + $0x50] sm:$0xff]  ;;  %v144_v24 = vld [vmem:[%s3282_s2 + $0x148] sm:$0xff] }
 0x145   :  { %vm983_vm15 = vcmp.le.f32.partialorder %v764_v19, %v765_v30  ;;  %vm975_vm1 = vcmp.le.f32.partialorder %v973_v35, %v763_v20  ;;  %2133 = vmatprep.subr.mxu1 %v163_v63  ;;  %2054 = vmatpush3.msra.mxu0 %v115_v0  ;;  %v145_v13 = vld [vmem:[%s3282_s2 + $0x150] sm:$0xff]  ;;  %v127_v25 = vld [vmem:[%s3282_s2 + $0xc0] sm:$0xff]  ;;  %v126_v32 = vld [vmem:[%s3282_s2 + $0xb8] sm:$0xff] }
 0x146   :  { %v985_v37 = vsel %vm983_vm15, %v2589_v14, %v2599_v22  ;;  %v984_v39 = vsel %vm983_vm15, %v764_v19, %v765_v30  ;;  %v2761_v41 = vsel %vm975_vm1, %v973_v35, %v763_v20  ;;  %v2766_v43 = vsel %vm975_vm1, %v974_v16, %v2612_v34  ;;  %2134 = vmatpush3.msra.mxu1 %v147_v1  ;;  %v128_v19 = vld [vmem:[%s3282_s2 + $0xc8] sm:$0xff]  ;;  %v111_v30 = vld [vmem:[%s3282_s2 + $0x40] sm:$0xff]  ;;  %v158_v35 = vld [vmem:[%s3282_s2 + $0x1b8] sm:$0xff] }
 0x147   :  { %vm986_vm2 = vcmp.le.f32.partialorder %v984_v39, %v766_v31  ;;  %2055 = vmatprep.subr.mxu0 %v130_v3  ;;  %2135 = vmatprep.subr.mxu1 %v162_v4  ;;  %v160_v20 = vld [vmem:[%s3282_s2 + $0x1c8] sm:$0xff]  ;;  %v110_v15 = vld [vmem:[%s3282_s2 + $0x38] sm:$0xff]  ;;  %v141_v16 = vld [vmem:[%s3282_s2 + $0x130] sm:$0xff] }
 0x148   :  { %v987_v17 = vsel %vm986_vm2, %v984_v39, %v766_v31  ;;  %v988_v42 = vsel %vm986_vm2, %v985_v37, %v2607_v29  ;;  %2056 = vmatpush3.msra.mxu0 %v114_v5  ;;  %2136 = vmatpush3.msra.mxu1 %v146_v7  ;;  %v143_v31 = vld [vmem:[%s3282_s2 + $0x140] sm:$0xff]  ;;  %v125_v37 = vld [vmem:[%s3282_s2 + $0xb0] sm:$0xff]  ;;  %v122_v54 = vld [vmem:[%s3282_s2 + $0x98] sm:$0xff] }
 0x149   :  { %vm989_vm3 = vcmp.le.f32.partialorder %v987_v17, %v767_v36  ;;  %2057 = vmatprep.subr.mxu0 %v129_v8  ;;  %2137 = vmatprep.subr.mxu1 %v161_v11  ;;  %v157_v39 = vld [vmem:[%s3282_s2 + $0x1b0] sm:$0xff]  ;;  %v107_v51 = vld [vmem:[%s3282_s2 + $0x20] sm:$0xff]  ;;  %v154_v57 = vld [vmem:[%s3282_s2 + $0x198] sm:$0xff] }
 0x14a   :  { %v2768_v44 = vsel %vm989_vm3, %v987_v17, %v767_v36  ;;  %v2771_v27 = vsel %vm989_vm3, %v988_v42, %v2612_v34  ;;  %2058 = vmatpush3.msra.mxu0 %v113_v12  ;;  %2138 = vmatpush3.msra.mxu1 %v145_v13  ;;  %v142_v36 = vld [vmem:[%s3282_s2 + $0x138] sm:$0xff]  ;;  %v109_v17 = vld [vmem:[%s3282_s2 + $0x30] sm:$0xff]  ;;  %v124_v42 = vld [vmem:[%s3282_s2 + $0xa8] sm:$0xff]  ;;  %vm1020_vm3 = vcmask 261312  }
 0x14b   :  { %2059 = vmatprep.subr.mxu0 %v128_v19  ;;  %2139 = vmatprep.subr.mxu1 %v160_v20  ;;  %v139_v52 = vld [vmem:[%s3282_s2 + $0x120] sm:$0xff]  ;;  %v106_v58 = vld [vmem:[%s3282_s2 + $0x18] sm:$0xff]  ;;  %v121_v60 = vld [vmem:[%s3282_s2 + $0x90] sm:$0xff] }
 0x14c   :  { %2060 = vmatpush3.msra.mxu0 %v112_v21  ;;  %2140 = vmatpush3.msra.mxu1 %v144_v24  ;;  %v138_v59 = vld [vmem:[%s3282_s2 + $0x118] sm:$0xff]  ;;  %v153_v62 = vld [vmem:[%s3282_s2 + $0x190] sm:$0xff]  ;;  %v120_v1 = vld [vmem:[%s3282_s2 + $0x88] sm:$0xff] }
 0x14d   :  { %2061 = vmatprep.subr.mxu0 %v127_v25  ;;  %2141 = vmatprep.subr.mxu1 %v159_v26  ;;  %v105_v63 = vld [vmem:[%s3282_s2 + $0x10] sm:$0xff]  ;;  %v152_v3 = vld [vmem:[%s3282_s2 + $0x188] sm:$0xff]  ;;  %v119_v8 = vld [vmem:[%s3282_s2 + $0x80] sm:$0xff] }
 0x14e   :  { %2062 = vmatpush3.msra.mxu0 %v111_v30  ;;  %2142 = vmatpush3.msra.mxu1 %v143_v31  ;;  %v137_v0 = vld [vmem:[%s3282_s2 + $0x110] sm:$0xff]  ;;  %v104_v4 = vld [vmem:[%s3282_s2 + $0x8] sm:$0xff]  ;;  %v151_v11 = vld [vmem:[%s3282_s2 + $0x180] sm:$0xff]  ;;  %v1015_v30 = vadd.s32 4294967272, %v2589_v14 }
 0x14f   :  { %2063 = vmatprep.subr.mxu0 %v126_v32  ;;  %2143 = vmatprep.subr.mxu1 %v158_v35  ;;  %v136_v5 = vld [vmem:[%s3282_s2 + $0x108] sm:$0xff]  ;;  %v103_v12 = vld [vmem:[%s3282_s2] sm:$0xff] }
 0x150   :  { %2064 = vmatpush3.msra.mxu0 %v110_v15  ;;  %2144 = vmatpush3.msra.mxu1 %v142_v36  ;;  %v135_v13 = vld [vmem:[%s3282_s2 + $0x100] sm:$0xff]  ;;  %v1018_v15 = vsub.s32 %v1015_v30, %v2581_v9  ;;  %v1022_v36 = vadd.s32 4294967264, %v2589_v14  ;;  %v1085_v30 = vadd.s32 4294967192, %v2589_v14 }
 0x151   :  { %2065 = vmatprep.subr.mxu0 %v125_v37  ;;  %2145 = vmatprep.subr.mxu1 %v157_v39 }
 0x152   :  { %2066 = vmatpush3.msra.mxu0 %v109_v17  ;;  %2146 = vmatpush3.msra.mxu1 %v141_v16  ;;  %v1025_v16 = vsub.s32 %v1022_v36, %v2581_v9 }
 0x153   :  { %2067 = vmatprep.subr.mxu0 %v124_v42  ;;  %2147 = vmatprep.subr.mxu1 %v156_v46 }
 0x154   :  { %2068 = vmatpush3.msra.mxu0 %v108_v47  ;;  %2148 = vmatpush3.msra.mxu1 %v140_v48 }
 0x155   :  { %2069 = vmatprep.subr.mxu0 %v123_v49  ;;  %2149 = vmatprep.subr.mxu1 %v155_v50  ;;  %v1029_v50 = vadd.s32 4294967256, %v2589_v14 }
 0x156   :  { %2070 = vmatpush3.msra.mxu0 %v107_v51  ;;  %2150 = vmatpush3.msra.mxu1 %v139_v52 }
 0x157   :  { %2071 = vmatprep.subr.mxu0 %v122_v54  ;;  %2151 = vmatprep.subr.mxu1 %v154_v57  ;;  %v1032_v54 = vsub.s32 %v1029_v50, %v2581_v9 }
 0x158   :  { %2072 = vmatpush3.msra.mxu0 %v106_v58  ;;  %2152 = vmatpush3.msra.mxu1 %v138_v59  ;;  %v1043_v58 = vadd.s32 4294967240, %v2589_v14  ;;  %v1036_v59 = vadd.s32 4294967248, %v2589_v14 }
 0x159   :  { %2073 = vmatprep.subr.mxu0 %v121_v60  ;;  %2153 = vmatprep.subr.mxu1 %v153_v62 }
 0x15a   :  { %2074 = vmatpush3.msra.mxu0 %v105_v63  ;;  %2154 = vmatpush3.msra.mxu1 %v137_v0  ;;  %v1039_v63 = vsub.s32 %v1036_v59, %v2581_v9 }
 0x15b   :  { %2075 = vmatprep.subr.mxu0 %v120_v1  ;;  %2155 = vmatprep.subr.mxu1 %v152_v3  ;;  %v1050_v3 = vadd.s32 4294967232, %v2589_v14 }
 0x15c   :  { %2076 = vmatpush3.msra.mxu0 %v104_v4  ;;  %2156 = vmatpush3.msra.mxu1 %v136_v5 }
 0x15d   :  { %2077 = vmatprep.subr.mxu0 %v119_v8  ;;  %2157 = vmatprep.subr.mxu1 %v151_v11  ;;  %v1053_v11 = vsub.s32 %v1050_v3, %v2581_v9 }
 0x15e   :  { %2078 = vmatpush3.msra.mxu0 %v103_v12  ;;  %2158 = vmatpush3.msra.mxu1 %v135_v13  ;;  %v1057_v12 = vadd.s32 4294967224, %v2589_v14 }
 0x198   :  { %v783_v7 = vpop.xlane.xlu0 %782 }
 0x199   :  { %2226 = vset.pattern.permute.xlu0 %v783_v7 }
 0x19c   :  { %v797_v19 = vpop.xlane.xlu1 %796 }
 0x19d   :  { %2227 = vset.pattern.permute.xlu1 %v797_v19  ;;  %785 = vperm.xlu0 %2226, %v2626_v53  }
 0x1a0   :  { %v811_v20 = vpop.xlane.xlu1 %810 }
 0x1a1   :  { %799 = vperm.xlu1 %2227, %v2635_v2   ;;  %2228 = vset.pattern.permute.xlu0 %v811_v20  ;;  %v1060_v20 = vsub.s32 %v1057_v12, %v2581_v9 }
 0x1a4   :  { %v825_v21 = vpop.xlane.xlu0 %824 }
 0x1a5   :  { %2229 = vset.pattern.permute.xlu1 %v825_v21  ;;  %813 = vperm.xlu0 %2228, %v2646_v23  }
 0x1a8   :  { %v839_v24 = vpop.xlane.xlu1 %838 }
 0x1a9   :  { %827 = vperm.xlu1 %2229, %v2656_v40   ;;  %2230 = vset.pattern.permute.xlu0 %v839_v24  ;;  %v1064_v24 = vadd.s32 4294967216, %v2589_v14 }
 0x1ac   :  { %v853_v25 = vpop.xlane.xlu1 %852 }
 0x1ad   :  { %2231 = vset.pattern.permute.xlu1 %v853_v25  ;;  %841 = vperm.xlu0 %2230, %v2666_v55  }
 0x1b0   :  { %v867_v53 = vpop.xlane.xlu0 %866 }
 0x1b4   :  { %v881_v26 = vpop.xlane.xlu1 %880 }
 0x1b5   :  { %2233 = vset.pattern.permute.xlu0 %v881_v26 }
 0x1b8   :  { %v895_v2 = vpop.xlane.xlu0 %894 }
 0x1bc   :  { %v909_v23 = vpop.xlane.xlu0 %908 }
 0x1c0   :  { %v923_v40 = vpop.xlane.xlu1 %922 }
 0x1c4   :  { %v937_v55 = vpop.xlane.xlu0 %936 }
 0x1cc   :  { %992 = vmin.index.xlane.f32.xlu0 %v2768_v44 }
 0x1cd   :  { %978 = vmin.index.xlane.f32.xlu1 %v2761_v41 }
 0x1de   :  { %855 = vperm.xlu1 %2231, %v2676_v6   ;;  %v951_v6 = vpop.xlane.xlu1 %950 }
 0x1e2   :  { %2232 = vset.pattern.permute.xlu1 %v867_v53  ;;  %883 = vperm.xlu0 %2233, %v2696_v45   ;;  %v1001_v45 = vadd.s32 4294967288, %v2589_v14  ;;  %v1067_v53 = vsub.s32 %v1064_v24, %v2581_v9 }
 0x1e6   :  { %869 = vperm.xlu1 %2232, %v2686_v28   ;;  %v965_v28 = vpop.xlane.xlu0 %964 }
 0x1ea   :  { %2234 = vset.pattern.permute.xlu1 %v895_v2 }
 0x1ee   :  { %897 = vperm.xlu1 %2234, %v2706_v61   ;;  %v999_v61 = vsub.s32 %v2589_v14, %v2581_v9 }
 0x1f2   :  { %2235 = vset.pattern.permute.xlu1 %v909_v23  ;;  %v1071_v23 = vadd.s32 4294967208, %v2589_v14 }
 0x1f6   :  { %911 = vperm.xlu1 %2235, %v2716_v18  }
 0x1fa   :  { %2236 = vset.pattern.permute.xlu1 %v923_v40 }
 0x1fe   :  { %925 = vperm.xlu1 %2236, %v2726_v38   ;;  %v1008_v38 = vadd.s32 4294967280, %v2589_v14 }
 0x200   :  { %v1011_v44 = vsub.s32 %v1008_v38, %v2581_v9 }
 0x202   :  { %2237 = vset.pattern.permute.xlu1 %v937_v55 }
 0x206   :  { %939 = vperm.xlu1 %2237, %v2736_v56   ;;  %v1004_v56 = vsub.s32 %v1001_v45, %v2581_v9  ;;  %v1078_v45 = vadd.s32 4294967200, %v2589_v14 }
 0x208   :  { %v1081_v38 = vsub.s32 %v1078_v45, %v2581_v9 }
 0x20a   :  { %2238 = vset.pattern.permute.xlu1 %v951_v6  ;;  %v1074_v6 = vsub.s32 %v1071_v23, %v2581_v9 }
 0x20e   :  { %953 = vperm.xlu1 %2238, %v2746_v10   ;;  %v2335_v10 = vmov 1.0  }
 0x212   :  { %2239 = vset.pattern.permute.xlu1 %v965_v28 }
 0x216   :  { %967 = vperm.xlu1 %2239, %v2754_v33  }
 0x218   :  { %v786_v18 = vpop.permute.xlu0 %785 }
 0x219   :  { %vm1108_vm4 = vcmp.eq.s32.totalorder %v2599_v22, %v786_v18  ;;  %vm1110_vm5 = vcmp.eq.s32.totalorder %v2612_v34, %v786_v18  ;;  %vm1107_vm6 = vcmp.eq.s32.totalorder %v2589_v14, %v786_v18  ;;  %vm1109_vm7 = vcmp.eq.s32.totalorder %v2607_v29, %v786_v18 }
 0x21a   :  { %1919 = vmatprep.mubr.msk.f32.mxu0 %vm1108_vm4, %v2335_v10  ;;  %1951 = vmatprep.mubr.msk.f32.mxu1 %vm1110_vm5, %v2335_v10  ;;  %v1000_v33 = vrot.slane %v786_v18, %v999_v61 }
 0x21b   :  { %1920 = vmatmul.mubr.msk.f32.vlgmr.msra.gmra.mxu0 %vm1107_vm6, %v2335_v10  ;;  %1952 = vmatmul.mubr.msk.f32.vlgmr.msra.gmra.mxu1 %vm1109_vm7, %v2335_v10 }
 0x21c   :  { %v800_v41 = vpop.permute.xlu1 %799 }
 0x21d   :  { %v1005_v31 = vrot.slane %v800_v41, %v1004_v56  ;;  %vm1112_vm9 = vcmp.eq.s32.totalorder %v2599_v22, %v800_v41  ;;  %vm1114_vm10 = vcmp.eq.s32.totalorder %v2612_v34, %v800_v41  ;;  %vm1111_vm11 = vcmp.eq.s32.totalorder %v2589_v14, %v800_v41 }
 0x21e   :  { %1921 = vmatprep.mubr.msk.f32.mxu0 %vm1112_vm9, %v2335_v10  ;;  %1953 = vmatprep.mubr.msk.f32.mxu1 %vm1114_vm10, %v2335_v10  ;;  %vm1113_vm12 = vcmp.eq.s32.totalorder %v2607_v29, %v800_v41 }
 0x21f   :  { %v1007_v32 = vsel %vm1006_vm8, %v1005_v31, %v1000_v33  ;;  %1922 = vmatmul.mubr.msk.f32.gmra.mxu0 %vm1111_vm11, %v2335_v10  ;;  %1954 = vmatmul.mubr.msk.f32.gmra.mxu1 %vm1113_vm12, %v2335_v10  ;;  %vm1027_vm8 = vcmask 326912  }
 0x220   :  { %v814_v35 = vpop.permute.xlu0 %813 }
 0x221   :  { %v1012_v37 = vrot.slane %v814_v35, %v1011_v44  ;;  %vm1116_vm14 = vcmp.eq.s32.totalorder %v2599_v22, %v814_v35  ;;  %vm1118_vm15 = vcmp.eq.s32.totalorder %v2612_v34, %v814_v35  ;;  %vm1115_vm1 = vcmp.eq.s32.totalorder %v2589_v14, %v814_v35 }
 0x222   :  { %1923 = vmatprep.mubr.msk.f32.mxu0 %vm1116_vm14, %v2335_v10  ;;  %1955 = vmatprep.mubr.msk.f32.mxu1 %vm1118_vm15, %v2335_v10  ;;  %vm1117_vm2 = vcmp.eq.s32.totalorder %v2607_v29, %v814_v35  ;;  %v1088_v35 = vsub.s32 %v1085_v30, %v2581_v9 }
 0x223   :  { %v1014_v39 = vsel %vm1013_vm13, %v1012_v37, %v1007_v32  ;;  %1924 = vmatmul.mubr.msk.f32.gmra.mxu0 %vm1115_vm1, %v2335_v10  ;;  %1956 = vmatmul.mubr.msk.f32.gmra.mxu1 %vm1117_vm2, %v2335_v10  ;;  %vm1034_vm13 = vcmask 392512   ;;  %v1092_v32 = vadd.s32 4294967184, %v2589_v14 }
 0x224   :  { %v828_v17 = vpop.permute.xlu1 %827 }
 0x225   :  { %v1019_v42 = vrot.slane %v828_v17, %v1018_v15  ;;  %vm1120_vm4 = vcmp.eq.s32.totalorder %v2599_v22, %v828_v17  ;;  %vm1122_vm5 = vcmp.eq.s32.totalorder %v2612_v34, %v828_v17  ;;  %vm1119_vm6 = vcmp.eq.s32.totalorder %v2589_v14, %v828_v17 }
 0x226   :  { %1925 = vmatprep.mubr.msk.f32.mxu0 %vm1120_vm4, %v2335_v10  ;;  %1957 = vmatprep.mubr.msk.f32.mxu1 %vm1122_vm5, %v2335_v10  ;;  %vm1121_vm7 = vcmp.eq.s32.totalorder %v2607_v29, %v828_v17  ;;  %vm1048_vm4 = vcmask 523712   ;;  %v1099_v15 = vadd.s32 4294967176, %v2589_v14  ;;  %v1095_v36 = vsub.s32 %v1092_v32, %v2581_v9 }
 0x227   :  { %v1021_v46 = vsel %vm1020_vm3, %v1019_v42, %v1014_v39  ;;  %1926 = vmatmul.mubr.msk.f32.gmra.mxu0 %vm1119_vm6, %v2335_v10  ;;  %1958 = vmatmul.mubr.msk.f32.gmra.mxu1 %vm1121_vm7, %v2335_v10  ;;  %vm1041_vm3 = vcmask 458112  }
 0x228   :  { %v842_v47 = vpop.permute.xlu0 %841 }
 0x229   :  { %v1026_v48 = vrot.slane %v842_v47, %v1025_v16  ;;  %vm1124_vm9 = vcmp.eq.s32.totalorder %v2599_v22, %v842_v47  ;;  %vm1126_vm10 = vcmp.eq.s32.totalorder %v2612_v34, %v842_v47  ;;  %vm1123_vm11 = vcmp.eq.s32.totalorder %v2589_v14, %v842_v47 }
 0x22a   :  { %1927 = vmatprep.mubr.msk.f32.mxu0 %vm1124_vm9, %v2335_v10  ;;  %1959 = vmatprep.mubr.msk.f32.mxu1 %vm1126_vm10, %v2335_v10  ;;  %vm1125_vm12 = vcmp.eq.s32.totalorder %v2607_v29, %v842_v47 }
 0x22b   :  { %v1028_v49 = vsel %vm1027_vm8, %v1026_v48, %v1021_v46  ;;  %1928 = vmatmul.mubr.msk.f32.gmra.mxu0 %vm1123_vm11, %v2335_v10  ;;  %1960 = vmatmul.mubr.msk.f32.gmra.mxu1 %vm1125_vm12, %v2335_v10  ;;  %v1102_v46 = vsub.s32 %v1099_v15, %v2581_v9 }
 0x255   :  { %v993_v51 = vpop.xlane.xlu0 %992 }
 0x256   :  { %v979_v52 = vpop.xlane.xlu1 %978  ;;  %2242 = vset.pattern.permute.xlu0 %v993_v51 }
 0x257   :  { %2240 = vset.pattern.permute.xlu1 %v979_v52 }
 0x25a   :  { %v856_v57 = vpop.permute.xlu1 %855 }
 0x25b   :  { %v1033_v60 = vrot.slane %v856_v57, %v1032_v54  ;;  %981 = vperm.xlu1 %2240, %v2766_v43   ;;  %vm1128_vm14 = vcmp.eq.s32.totalorder %v2599_v22, %v856_v57  ;;  %vm1130_vm15 = vcmp.eq.s32.totalorder %v2612_v34, %v856_v57  ;;  %vm1127_vm1 = vcmp.eq.s32.totalorder %v2589_v14, %v856_v57 }
 0x25c   :  { %1929 = vmatprep.mubr.msk.f32.mxu0 %vm1128_vm14, %v2335_v10  ;;  %1961 = vmatprep.mubr.msk.f32.mxu1 %vm1130_vm15, %v2335_v10  ;;  %vm1129_vm2 = vcmp.eq.s32.totalorder %v2607_v29, %v856_v57  ;;  %v1046_v43 = vsub.s32 %v1043_v58, %v2581_v9 }
 0x25d   :  { %v1035_v62 = vsel %vm1034_vm13, %v1033_v60, %v1028_v49  ;;  %1930 = vmatmul.mubr.msk.f32.gmra.mxu0 %vm1127_vm1, %v2335_v10  ;;  %1962 = vmatmul.mubr.msk.f32.gmra.mxu1 %vm1129_vm2, %v2335_v10  ;;  %v884_v0 = vpop.permute.xlu0 %883  ;;  %vm1055_vm13 = vcmask 589312  }
 0x25e   :  { %v1047_v5 = vrot.slane %v884_v0, %v1046_v43  ;;  %vm1136_vm9 = vcmp.eq.s32.totalorder %v2599_v22, %v884_v0  ;;  %vm1138_vm10 = vcmp.eq.s32.totalorder %v2612_v34, %v884_v0  ;;  %vm1135_vm11 = vcmp.eq.s32.totalorder %v2589_v14, %v884_v0 }
 0x25f   :  { %2241 = vset.pattern.permute.xlu1 %v993_v51  ;;  %vm1137_vm12 = vcmp.eq.s32.totalorder %v2607_v29, %v884_v0 }
 0x261   :  { %v870_v1 = vpop.permute.xlu1 %869 }
 0x262   :  { %v1040_v4 = vrot.slane %v870_v1, %v1039_v63  ;;  %vm1132_vm5 = vcmp.eq.s32.totalorder %v2599_v22, %v870_v1  ;;  %vm1134_vm6 = vcmp.eq.s32.totalorder %v2612_v34, %v870_v1  ;;  %vm1131_vm7 = vcmp.eq.s32.totalorder %v2589_v14, %v870_v1 }
 0x263   :  { %1931 = vmatprep.mubr.msk.f32.mxu0 %vm1132_vm5, %v2335_v10  ;;  %1963 = vmatprep.mubr.msk.f32.mxu1 %vm1134_vm6, %v2335_v10  ;;  %vm1133_vm8 = vcmp.eq.s32.totalorder %v2607_v29, %v870_v1 }
 0x264   :  { %v1042_v7 = vsel %vm1041_vm3, %v1040_v4, %v1035_v62  ;;  %995 = vperm.xlu1 %2241, %v2771_v27   ;;  %1932 = vmatmul.mubr.msk.f32.gmra.mxu0 %vm1131_vm7, %v2335_v10  ;;  %vm1062_vm3 = vcmask 654912  }
 0x265   :  { %1964 = vmatmul.mubr.msk.f32.gmra.mxu1 %vm1133_vm8, %v2335_v10  ;;  %1933 = vmatprep.mubr.msk.f32.mxu0 %vm1136_vm9, %v2335_v10  ;;  %v1049_v8 = vsel %vm1048_vm4, %v1047_v5, %v1042_v7  ;;  %vm1069_vm8 = vcmask 720512  }
 0x266   :  { %1965 = vmatprep.mubr.msk.f32.mxu1 %vm1138_vm10, %v2335_v10 }
 0x268   :  { %1934 = vmatmul.mubr.msk.f32.gmra.mxu0 %vm1135_vm11, %v2335_v10 }
 0x269   :  { %1966 = vmatmul.mubr.msk.f32.gmra.mxu1 %vm1137_vm12, %v2335_v10  ;;  %v898_v27 = vpop.permute.xlu1 %897 }
 0x26a   :  { %v1054_v13 = vrot.slane %v898_v27, %v1053_v11  ;;  %vm1140_vm14 = vcmp.eq.s32.totalorder %v2599_v22, %v898_v27  ;;  %vm1142_vm15 = vcmp.eq.s32.totalorder %v2612_v34, %v898_v27  ;;  %vm1139_vm1 = vcmp.eq.s32.totalorder %v2589_v14, %v898_v27 }
 0x26b   :  { %1935 = vmatprep.mubr.msk.f32.mxu0 %vm1140_vm14, %v2335_v10  ;;  %1967 = vmatprep.mubr.msk.f32.mxu1 %vm1142_vm15, %v2335_v10  ;;  %vm1141_vm2 = vcmp.eq.s32.totalorder %v2607_v29, %v898_v27 }
 0x26c   :  { %v1056_v19 = vsel %vm1055_vm13, %v1054_v13, %v1049_v8  ;;  %1936 = vmatmul.mubr.msk.f32.gmra.mxu0 %vm1139_vm1, %v2335_v10  ;;  %vm1076_vm13 = vcmask 786112  }
 0x26d   :  { %1968 = vmatmul.mubr.msk.f32.gmra.mxu1 %vm1141_vm2, %v2335_v10 }
 0x271   :  { %v912_v21 = vpop.permute.xlu1 %911 }
 0x272   :  { %v1061_v25 = vrot.slane %v912_v21, %v1060_v20  ;;  %vm1144_vm4 = vcmp.eq.s32.totalorder %v2599_v22, %v912_v21  ;;  %vm1146_vm5 = vcmp.eq.s32.totalorder %v2612_v34, %v912_v21  ;;  %vm1143_vm6 = vcmp.eq.s32.totalorder %v2589_v14, %v912_v21 }
 0x273   :  { %1937 = vmatprep.mubr.msk.f32.mxu0 %vm1144_vm4, %v2335_v10  ;;  %1969 = vmatprep.mubr.msk.f32.mxu1 %vm1146_vm5, %v2335_v10  ;;  %vm1145_vm7 = vcmp.eq.s32.totalorder %v2607_v29, %v912_v21 }
 0x274   :  { %v1063_v26 = vsel %vm1062_vm3, %v1061_v25, %v1056_v19  ;;  %1938 = vmatmul.mubr.msk.f32.gmra.mxu0 %vm1143_vm6, %v2335_v10  ;;  %1970 = vmatmul.mubr.msk.f32.gmra.mxu1 %vm1145_vm7, %v2335_v10  ;;  %vm1083_vm3 = vcmask 851712  }
 0x279   :  { %v926_v2 = vpop.permute.xlu1 %925 }
 0x27a   :  { %v1068_v40 = vrot.slane %v926_v2, %v1067_v53  ;;  %vm1148_vm9 = vcmp.eq.s32.totalorder %v2599_v22, %v926_v2  ;;  %vm1150_vm10 = vcmp.eq.s32.totalorder %v2612_v34, %v926_v2  ;;  %vm1147_vm11 = vcmp.eq.s32.totalorder %v2589_v14, %v926_v2 }
 0x27b   :  { %1939 = vmatprep.mubr.msk.f32.mxu0 %vm1148_vm9, %v2335_v10  ;;  %1971 = vmatprep.mubr.msk.f32.mxu1 %vm1150_vm10, %v2335_v10  ;;  %vm1149_vm12 = vcmp.eq.s32.totalorder %v2607_v29, %v926_v2 }
 0x27c   :  { %1940 = vmatmul.mubr.msk.f32.gmra.mxu0 %vm1147_vm11, %v2335_v10  ;;  %1972 = vmatmul.mubr.msk.f32.gmra.mxu1 %vm1149_vm12, %v2335_v10  ;;  %v1070_v55 = vsel %vm1069_vm8, %v1068_v40, %v1063_v26  ;;  %v2277_v26 = vld [vmem:[%s3280_s0 + $0x10] sm:$0xff] }
 0x281   :  { %v940_v28 = vpop.permute.xlu1 %939 }
 0x282   :  { %v1075_v61 = vrot.slane %v940_v28, %v1074_v6  ;;  %vm1152_vm14 = vcmp.eq.s32.totalorder %v2599_v22, %v940_v28  ;;  %vm1154_vm15 = vcmp.eq.s32.totalorder %v2612_v34, %v940_v28  ;;  %vm1151_vm1 = vcmp.eq.s32.totalorder %v2589_v14, %v940_v28 }
 0x283   :  { %1941 = vmatprep.mubr.msk.f32.mxu0 %vm1152_vm14, %v2335_v10  ;;  %1973 = vmatprep.mubr.msk.f32.mxu1 %vm1154_vm15, %v2335_v10  ;;  %vm1153_vm2 = vcmp.eq.s32.totalorder %v2607_v29, %v940_v28 }
 0x284   :  { %1942 = vmatmul.mubr.msk.f32.gmra.mxu0 %vm1151_vm1, %v2335_v10  ;;  %1974 = vmatmul.mubr.msk.f32.gmra.mxu1 %vm1153_vm2, %v2335_v10  ;;  %v1077_v18 = vsel %vm1076_vm13, %v1075_v61, %v1070_v55  ;;  %vm1090_vm1 = vcmask 917312   ;;  %vm1097_vm2 = vcmask 982912  }
 0x289   :  { %v954_v56 = vpop.permute.xlu1 %953 }
 0x28a   :  { %v1082_v33 = vrot.slane %v954_v56, %v1081_v38  ;;  %vm1156_vm4 = vcmp.eq.s32.totalorder %v2599_v22, %v954_v56  ;;  %vm1158_vm5 = vcmp.eq.s32.totalorder %v2612_v34, %v954_v56  ;;  %vm1155_vm6 = vcmp.eq.s32.totalorder %v2589_v14, %v954_v56 }
 0x28b   :  { %1943 = vmatprep.mubr.msk.f32.mxu0 %vm1156_vm4, %v2335_v10  ;;  %1975 = vmatprep.mubr.msk.f32.mxu1 %vm1158_vm5, %v2335_v10  ;;  %vm1157_vm7 = vcmp.eq.s32.totalorder %v2607_v29, %v954_v56  ;;  %v2278_v56 = vld [vmem:[%s3280_s0 + $0x18] sm:$0xff] }
 0x28c   :  { %1944 = vmatmul.mubr.msk.f32.gmra.mxu0 %vm1155_vm6, %v2335_v10  ;;  %1976 = vmatmul.mubr.msk.f32.gmra.mxu1 %vm1157_vm7, %v2335_v10  ;;  %v1084_v41 = vsel %vm1083_vm3, %v1082_v33, %v1077_v18  ;;  %vm1104_vm3 = vcmask 1048512  }
 0x291   :  { %v968_v44 = vpop.permute.xlu1 %967 }
 0x292   :  { %vm1160_vm8 = vcmp.eq.s32.totalorder %v2599_v22, %v968_v44  ;;  %vm1162_vm9 = vcmp.eq.s32.totalorder %v2612_v34, %v968_v44  ;;  %vm1159_vm10 = vcmp.eq.s32.totalorder %v2589_v14, %v968_v44  ;;  %vm1161_vm11 = vcmp.eq.s32.totalorder %v2607_v29, %v968_v44 }
 0x293   :  { %1945 = vmatprep.mubr.msk.f32.mxu0 %vm1160_vm8, %v2335_v10  ;;  %1977 = vmatprep.mubr.msk.f32.mxu1 %vm1162_vm9, %v2335_v10  ;;  %v1089_v17 = vrot.slane %v968_v44, %v1088_v35  ;;  %v2279_v35 = vld [vmem:[%s3280_s0 + $0x20] sm:$0xff] }
 0x294   :  { %1946 = vmatmul.mubr.msk.f32.gmra.mxu0 %vm1159_vm10, %v2335_v10  ;;  %1978 = vmatmul.mubr.msk.f32.gmra.mxu1 %vm1161_vm11, %v2335_v10 }
 0x295   :  { %v1091_v57 = vsel %vm1090_vm1, %v1089_v17, %v1084_v41 }
 0x2d6   :  { %v982_v31 = vpop.permute.xlu1 %981 }
 0x2d7   :  { %vm1164_vm12 = vcmp.eq.s32.totalorder %v2599_v22, %v982_v31  ;;  %vm1166_vm13 = vcmp.eq.s32.totalorder %v2612_v34, %v982_v31  ;;  %vm1163_vm14 = vcmp.eq.s32.totalorder %v2589_v14, %v982_v31  ;;  %vm1165_vm15 = vcmp.eq.s32.totalorder %v2607_v29, %v982_v31 }
 0x2d8   :  { %1947 = vmatprep.mubr.msk.f32.mxu0 %vm1164_vm12, %v2335_v10  ;;  %1979 = vmatprep.mubr.msk.f32.mxu1 %vm1166_vm13, %v2335_v10  ;;  %v1096_v49 = vrot.slane %v982_v31, %v1095_v36 }
 0x2d9   :  { %1948 = vmatmul.mubr.msk.f32.gmra.mxu0 %vm1163_vm14, %v2335_v10  ;;  %1980 = vmatmul.mubr.msk.f32.gmra.mxu1 %vm1165_vm15, %v2335_v10 }
 0x2db   :  { %v2079_v37 = vpop.f32.mrf.mxu0  ;;  %v2159_v39 = vpop.f32.mrf.mxu1 }
 0x2dd   :  { %v2080_v16 = vpop.f32.mrf.mxu0  ;;  %v2160_v42 = vpop.f32.mrf.mxu1 }
 0x2de   :  { %v2081_v47 = vadd.f32 %v2080_v16, %v2079_v37  ;;  %v2161_v48 = vadd.f32 %v2160_v42, %v2159_v39 }
 0x2df   :  { %v996_v50 = vpop.permute.xlu1 %995  ;;  %v2082_v51 = vpop.f32.mrf.mxu0 }
 0x2e0   :  { %v1511_v52 = vadd.f32 %v2161_v48, %v2081_v47  ;;  %v2162_v54 = vpop.f32.mrf.mxu1  ;;  %vm1168_vm4 = vcmp.eq.s32.totalorder %v2599_v22, %v996_v50  ;;  %vm1170_vm5 = vcmp.eq.s32.totalorder %v2612_v34, %v996_v50  ;;  %vm1167_vm6 = vcmp.eq.s32.totalorder %v2589_v14, %v996_v50  ;;  %v2275_v34 = vld [vmem:[%s3280_s0] sm:$0xff] }
 0x2e1   :  { %1949 = vmatprep.mubr.msk.f32.mxu0 %vm1168_vm4, %v2335_v10  ;;  %1981 = vmatprep.mubr.msk.f32.mxu1 %vm1170_vm5, %v2335_v10  ;;  %v2083_v9 = vpop.f32.mrf.mxu0  ;;  %vm1169_vm7 = vcmp.eq.s32.totalorder %v2607_v29, %v996_v50  ;;  %v1103_v58 = vrot.slane %v996_v50, %v1102_v46  ;;  %v1098_v14 = vsel %vm1097_vm2, %v1096_v49, %v1091_v57 }
 0x2e2   :  { %1589 = vst.msk [vmem:[%s3284_s4] sm:$0xff] %vm336_vm0, %v1511_v52  ;;  %v2084_v59 = vadd.f32 %v2083_v9, %v2082_v51  ;;  %1950 = vmatmul.mubr.msk.f32.gmra.mxu0 %vm1167_vm6, %v2335_v10  ;;  %v2163_v22 = vpop.f32.mrf.mxu1  ;;  %1982 = vmatmul.mubr.msk.f32.gmra.mxu1 %vm1169_vm7, %v2335_v10  ;;  %v1640_v29 = vsub.f32 %v1511_v52, %v2275_v34  ;;  %v2276_v10 = vld [vmem:[%s3280_s0 + $0x8] sm:$0xff] }
 0x2e3   :  { %v2164_v60 = vadd.f32 %v2163_v22, %v2162_v54  ;;  %v2085_v62 = vpop.f32.mrf.mxu0  ;;  %v1105_v63 = vsel %vm1104_vm3, %v1103_v58, %v1098_v14  ;;  %v2280_v51 = vld [vmem:[%s3280_s0 + $0x28] sm:$0xff] }
 0x2e4   :  { %v2165_v43 = vpop.f32.mrf.mxu1  ;;  %1106 = vst [vmem:[#allocation2] sm:$0x1] %v1105_v63  ;;  %v1720_v5 = vmul.f32 %v1640_v29, %v1640_v29 }
 0x2e5   :  { %v1516_v0 = vadd.f32 %v2164_v60, %v2084_v59  ;;  %v2086_v1 = vpop.f32.mrf.mxu0 }
 0x2e6   :  { %v2087_v3 = vadd.f32 %v2086_v1, %v2085_v62  ;;  %v2166_v4 = vpop.f32.mrf.mxu1  ;;  %v1736_v24 = vsel %vm336_vm0, %v1720_v5, 0.0 }
 0x2e7   :  { %1590 = vst.msk [vmem:[%s3284_s4 + $0x8] sm:$0xff] %vm336_vm0, %v1516_v0  ;;  %v1641_v7 = vsub.f32 %v1516_v0, %v2276_v10  ;;  %v2167_v8 = vadd.f32 %v2166_v4, %v2165_v43  ;;  %v2088_v11 = vpop.f32.mrf.mxu0 }
 0x2e8   :  { %v2168_v27 = vpop.f32.mrf.mxu1 }
 0x2e9   :  { %v1721_v12 = vmul.f32 %v1641_v7, %v1641_v7  ;;  %v1521_v13 = vadd.f32 %v2167_v8, %v2087_v3  ;;  %v2089_v19 = vpop.f32.mrf.mxu0  ;;  %v2281_v3 = vld [vmem:[%s3280_s0 + $0x30] sm:$0xff] }
 0x2ea   :  { %v2090_v20 = vadd.f32 %v2089_v19, %v2088_v11  ;;  %v2169_v21 = vpop.f32.mrf.mxu1 }
 0x2eb   :  { %v1737_v25 = vsel %vm336_vm0, %v1721_v12, 0.0  ;;  %1591 = vst.msk [vmem:[%s3284_s4 + $0x10] sm:$0xff] %vm336_vm0, %v1521_v13  ;;  %v1642_v53 = vsub.f32 %v1521_v13, %v2277_v26  ;;  %v2170_v2 = vadd.f32 %v2169_v21, %v2168_v27  ;;  %v2091_v23 = vpop.f32.mrf.mxu0 }
 0x2ec   :  { %v1738_v40 = vadd.f32 %v1737_v25, %v1736_v24  ;;  %v2171_v55 = vpop.f32.mrf.mxu1 }
 0x2ed   :  { %v1722_v6 = vmul.f32 %v1642_v53, %v1642_v53  ;;  %v1526_v28 = vadd.f32 %v2170_v2, %v2090_v20  ;;  %v2092_v45 = vpop.f32.mrf.mxu0  ;;  %v2282_v20 = vld [vmem:[%s3280_s0 + $0x38] sm:$0xff] }
 0x2ee   :  { %v2093_v61 = vadd.f32 %v2092_v45, %v2091_v23  ;;  %v2172_v18 = vpop.f32.mrf.mxu1 }
 0x2ef   :  { %v1739_v38 = vsel %vm336_vm0, %v1722_v6, 0.0  ;;  %1592 = vst.msk [vmem:[%s3284_s4 + $0x18] sm:$0xff] %vm336_vm0, %v1526_v28  ;;  %v1643_v33 = vsub.f32 %v1526_v28, %v2278_v56  ;;  %v2173_v41 = vadd.f32 %v2172_v18, %v2171_v55 }
 0x2f0   :  { %v1740_v44 = vadd.f32 %v1739_v38, %v1738_v40 }
 0x2f1   :  { %v1723_v30 = vmul.f32 %v1643_v33, %v1643_v33  ;;  %v1531_v31 = vadd.f32 %v2173_v41, %v2093_v61 }
 0x2f3   :  { %v1741_v32 = vsel %vm336_vm0, %v1723_v30, 0.0  ;;  %1593 = vst.msk [vmem:[%s3284_s4 + $0x20] sm:$0xff] %vm336_vm0, %v1531_v31  ;;  %v1644_v15 = vsub.f32 %v1531_v31, %v2279_v35 }
 0x2f4   :  { %v1742_v36 = vadd.f32 %v1741_v32, %v1740_v44 }
 0x2f5   :  { %v1724_v37 = vmul.f32 %v1644_v15, %v1644_v15 }
 0x2f7   :  { %v1743_v39 = vsel %vm336_vm0, %v1724_v37, 0.0 }
 0x2f8   :  { %v1744_v17 = vadd.f32 %v1743_v39, %v1742_v36 }
 0x31d   :  { %v2094_v16 = vpop.f32.mrf.mxu0  ;;  %v2174_v42 = vpop.f32.mrf.mxu1 }
 0x31f   :  { %v2095_v46 = vpop.f32.mrf.mxu0  ;;  %v2175_v47 = vpop.f32.mrf.mxu1 }
 0x320   :  { %v2096_v48 = vadd.f32 %v2095_v46, %v2094_v16  ;;  %v2176_v49 = vadd.f32 %v2175_v47, %v2174_v42 }
 0x322   :  { %v1536_v50 = vadd.f32 %v2176_v49, %v2096_v48 }
 0x324   :  { %1594 = vst.msk [vmem:[%s3284_s4 + $0x28] sm:$0xff] %vm336_vm0, %v1536_v50  ;;  %v1645_v52 = vsub.f32 %v1536_v50, %v2280_v51  ;;  %v2097_v54 = vpop.f32.mrf.mxu0 }
 0x325   :  { %v2177_v9 = vpop.f32.mrf.mxu1 }
 0x326   :  { %v1725_v57 = vmul.f32 %v1645_v52, %v1645_v52  ;;  %v2098_v58 = vpop.f32.mrf.mxu0 }
 0x327   :  { %v2099_v59 = vadd.f32 %v2098_v58, %v2097_v54  ;;  %v2178_v22 = vpop.f32.mrf.mxu1 }
 0x328   :  { %v1745_v14 = vsel %vm336_vm0, %v1725_v57, 0.0  ;;  %v2179_v34 = vadd.f32 %v2178_v22, %v2177_v9  ;;  %v2100_v29 = vpop.f32.mrf.mxu0 }
 0x329   :  { %v1746_v60 = vadd.f32 %v1745_v14, %v1744_v17  ;;  %v2180_v62 = vpop.f32.mrf.mxu1 }
 0x32a   :  { %v1541_v63 = vadd.f32 %v2179_v34, %v2099_v59  ;;  %v2101_v43 = vpop.f32.mrf.mxu0 }
 0x32b   :  { %v2102_v0 = vadd.f32 %v2101_v43, %v2100_v29  ;;  %v2181_v1 = vpop.f32.mrf.mxu1 }
 0x32c   :  { %1595 = vst.msk [vmem:[%s3284_s4 + $0x30] sm:$0xff] %vm336_vm0, %v1541_v63  ;;  %v1646_v4 = vsub.f32 %v1541_v63, %v2281_v3  ;;  %v2182_v5 = vadd.f32 %v2181_v1, %v2180_v62  ;;  %v2103_v10 = vpop.f32.mrf.mxu0 }
 0x32d   :  { %v2183_v7 = vpop.f32.mrf.mxu1 }
 0x32e   :  { %v1726_v8 = vmul.f32 %v1646_v4, %v1646_v4  ;;  %v1546_v11 = vadd.f32 %v2182_v5, %v2102_v0  ;;  %v2104_v27 = vpop.f32.mrf.mxu0 }
 0x32f   :  { %v2105_v12 = vadd.f32 %v2104_v27, %v2103_v10  ;;  %v2184_v13 = vpop.f32.mrf.mxu1 }
 0x330   :  { %v1747_v19 = vsel %vm336_vm0, %v1726_v8, 0.0  ;;  %1596 = vst.msk [vmem:[%s3284_s4 + $0x38] sm:$0xff] %vm336_vm0, %v1546_v11  ;;  %v1647_v21 = vsub.f32 %v1546_v11, %v2282_v20  ;;  %v2185_v24 = vadd.f32 %v2184_v13, %v2183_v7 }
 0x331   :  { %v1748_v25 = vadd.f32 %v1747_v19, %v1746_v60 }
 0x332   :  { %2302 = shalt.err (!%p2299_p4)
}
 0x333   :  { %1786 = dma.vmem_to_hbm [thread:$0]  %s1784_s1, 16, %s3285_s5, [#allocation3]   ;;  %v1727_v26 = vmul.f32 %v1647_v21, %v1647_v21  ;;  %v1551_v53 = vadd.f32 %v2185_v24, %v2105_v12  ;;  %v2283_v23 = vld [vmem:[%s3280_s0 + $0x40] sm:$0xff]  ;;  %v2284_v30 = vld [vmem:[%s3280_s0 + $0x48] sm:$0xff]  ;;  %v2285_v47 = vld [vmem:[%s3280_s0 + $0x50] sm:$0xff]  ;;  %vm1773_vm8 = vcmask 253952  }
 0x334   :  { %v2106_v55 = vpop.f32.mrf.mxu0  ;;  %v2186_v6 = vpop.f32.mrf.mxu1  ;;  %v2286_v14 = vld [vmem:[%s3280_s0 + $0x58] sm:$0xff]  ;;  %v2287_v10 = vld [vmem:[%s3280_s0 + $0x60] sm:$0xff]  ;;  %s2337_s5 = smov [#allocation4]  }
 0x335   :  { %v1749_v2 = vsel %vm336_vm0, %v1727_v26, 0.0  ;;  %1597 = vst.msk [vmem:[%s3284_s4 + $0x40] sm:$0xff] %vm336_vm0, %v1551_v53  ;;  %v1648_v40 = vsub.f32 %v1551_v53, %v2283_v23  ;;  %v2288_v26 = vld [vmem:[%s3280_s0 + $0x68] sm:$0xff]  ;;  %s1793_s8 = sshll.u32 %s2337_s5, 4  ;;  %s1794_s8 = int_to_ptr.vmem [resolvable:$true] %s1793_s8 }
 0x336   :  { %v1750_v28 = vadd.f32 %v1749_v2, %v1748_v25  ;;  %v2107_v61 = vpop.f32.mrf.mxu0  ;;  %v2187_v18 = vpop.f32.mrf.mxu1  ;;  %p2316_p6 = scmp.lt.s32.totalorder %s1794_s8, %s1794_s8 }
 0x337   :  { %v1728_v45 = vmul.f32 %v1648_v40, %v1648_v40  ;;  %v2108_v38 = vadd.f32 %v2107_v61, %v2106_v55  ;;  %v2188_v56 = vadd.f32 %v2187_v18, %v2186_v6 }
 0x339   :  { %v1751_v33 = vsel %vm336_vm0, %v1728_v45, 0.0  ;;  %v1556_v44 = vadd.f32 %v2188_v56, %v2108_v38  ;;  %v2289_v56 = vld [vmem:[%s3280_s0 + $0x70] sm:$0xff] }
 0x33a   :  { %v1752_v41 = vadd.f32 %v1751_v33, %v1750_v28 }
 0x33b   :  { %1598 = vst.msk [vmem:[%s3284_s4 + $0x48] sm:$0xff] %vm336_vm0, %v1556_v44  ;;  %v1649_v31 = vsub.f32 %v1556_v44, %v2284_v30 }
 0x33c   :  { %v2109_v32 = vpop.f32.mrf.mxu0  ;;  %v2189_v35 = vpop.f32.mrf.mxu1 }
 0x33d   :  { %v1729_v15 = vmul.f32 %v1649_v31, %v1649_v31 }
 0x33e   :  { %v2110_v36 = vpop.f32.mrf.mxu0  ;;  %v2190_v37 = vpop.f32.mrf.mxu1 }
 0x33f   :  { %v1753_v39 = vsel %vm336_vm0, %v1729_v15, 0.0  ;;  %v2111_v17 = vadd.f32 %v2110_v36, %v2109_v32  ;;  %v2191_v16 = vadd.f32 %v2190_v37, %v2189_v35 }
 0x340   :  { %v1754_v42 = vadd.f32 %v1753_v39, %v1752_v41  ;;  %v2290_v39 = vld [vmem:[%s3280_s0 + $0x78] sm:$0xff]  ;;  %s2315_s0 = scalar_lea.vmem %s1794_s8, 32 }
 0x341   :  { %v1561_v46 = vadd.f32 %v2191_v16, %v2111_v17 }
 0x343   :  { %1599 = vst.msk [vmem:[%s3284_s4 + $0x50] sm:$0xff] %vm336_vm0, %v1561_v46  ;;  %v1650_v48 = vsub.f32 %v1561_v46, %v2285_v47 }
 0x344   :  { %v2112_v49 = vpop.f32.mrf.mxu0  ;;  %v2192_v50 = vpop.f32.mrf.mxu1 }
 0x345   :  { %v1730_v51 = vmul.f32 %v1650_v48, %v1650_v48 }
 0x346   :  { %v2113_v52 = vpop.f32.mrf.mxu0  ;;  %v2193_v54 = vpop.f32.mrf.mxu1 }
 0x347   :  { %v1755_v9 = vsel %vm336_vm0, %v1730_v51, 0.0  ;;  %v2114_v57 = vadd.f32 %v2113_v52, %v2112_v49  ;;  %v2194_v58 = vadd.f32 %v2193_v54, %v2192_v50 }
 0x348   :  { %v1756_v59 = vadd.f32 %v1755_v9, %v1754_v42 }
 0x349   :  { %v1566_v22 = vadd.f32 %v2194_v58, %v2114_v57 }
 0x34b   :  { %1600 = vst.msk [vmem:[%s3284_s4 + $0x58] sm:$0xff] %vm336_vm0, %v1566_v22  ;;  %v1651_v34 = vsub.f32 %v1566_v22, %v2286_v14 }
 0x34c   :  { %v2115_v29 = vpop.f32.mrf.mxu0  ;;  %v2195_v60 = vpop.f32.mrf.mxu1 }
 0x34d   :  { %v1731_v62 = vmul.f32 %v1651_v34, %v1651_v34 }
 0x34e   :  { %v2116_v63 = vpop.f32.mrf.mxu0  ;;  %v2196_v43 = vpop.f32.mrf.mxu1 }
 0x34f   :  { %v1757_v0 = vsel %vm336_vm0, %v1731_v62, 0.0  ;;  %v2117_v1 = vadd.f32 %v2116_v63, %v2115_v29  ;;  %v2197_v3 = vadd.f32 %v2196_v43, %v2195_v60 }
 0x350   :  { %v1758_v4 = vadd.f32 %v1757_v0, %v1756_v59 }
 0x351   :  { %v1571_v5 = vadd.f32 %v2197_v3, %v2117_v1 }
 0x353   :  { %1601 = vst.msk [vmem:[%s3284_s4 + $0x60] sm:$0xff] %vm336_vm0, %v1571_v5  ;;  %v1652_v7 = vsub.f32 %v1571_v5, %v2287_v10 }
 0x354   :  { %v2118_v8 = vpop.f32.mrf.mxu0  ;;  %v2198_v11 = vpop.f32.mrf.mxu1 }
 0x355   :  { %v1732_v27 = vmul.f32 %v1652_v7, %v1652_v7 }
 0x356   :  { %v2119_v12 = vpop.f32.mrf.mxu0  ;;  %v2199_v13 = vpop.f32.mrf.mxu1 }
 0x357   :  { %v1759_v19 = vsel %vm336_vm0, %v1732_v27, 0.0  ;;  %v2120_v20 = vadd.f32 %v2119_v12, %v2118_v8  ;;  %v2200_v21 = vadd.f32 %v2199_v13, %v2198_v11 }
 0x358   :  { %v1760_v24 = vadd.f32 %v1759_v19, %v1758_v4 }
 0x359   :  { %v1576_v25 = vadd.f32 %v2200_v21, %v2120_v20 }
 0x35b   :  { %1602 = vst.msk [vmem:[%s3284_s4 + $0x68] sm:$0xff] %vm336_vm0, %v1576_v25  ;;  %v1653_v53 = vsub.f32 %v1576_v25, %v2288_v26 }
 0x35d   :  { %v1733_v2 = vmul.f32 %v1653_v53, %v1653_v53 }
 0x35f   :  { %v1761_v23 = vsel %vm336_vm0, %v1733_v2, 0.0 }
 0x360   :  { %v1762_v40 = vadd.f32 %v1761_v23, %v1760_v24 }
 0x399   :  { %v2121_v55 = vpop.f32.mrf.mxu0  ;;  %v2201_v6 = vpop.f32.mrf.mxu1 }
 0x39b   :  { %v2122_v28 = vpop.f32.mrf.mxu0  ;;  %v2202_v45 = vpop.f32.mrf.mxu1 }
 0x39c   :  { %v2123_v61 = vadd.f32 %v2122_v28, %v2121_v55  ;;  %v2203_v18 = vadd.f32 %v2202_v45, %v2201_v6 }
 0x39e   :  { %v1581_v38 = vadd.f32 %v2203_v18, %v2123_v61 }
 0x3a0   :  { %1603 = vst.msk [vmem:[%s3284_s4 + $0x70] sm:$0xff] %vm336_vm0, %v1581_v38  ;;  %v1654_v33 = vsub.f32 %v1581_v38, %v2289_v56 }
 0x3a2   :  { %v2124_v41 = vpop.f32.mrf.mxu0  ;;  %v2204_v44 = vpop.f32.mrf.mxu1  ;;  %v1734_v32 = vmul.f32 %v1654_v33, %v1654_v33 }
 0x3a4   :  { %v2125_v30 = vpop.f32.mrf.mxu0  ;;  %v2205_v31 = vpop.f32.mrf.mxu1  ;;  %v1763_v37 = vsel %vm336_vm0, %v1734_v32, 0.0 }
 0x3a5   :  { %v2126_v35 = vadd.f32 %v2125_v30, %v2124_v41  ;;  %v2206_v15 = vadd.f32 %v2205_v31, %v2204_v44  ;;  %v1764_v42 = vadd.f32 %v1763_v37, %v1762_v40 }
 0x3a7   :  { %v1586_v36 = vadd.f32 %v2206_v15, %v2126_v35 }
 0x3a9   :  { %1604 = vst.msk [vmem:[%s3284_s4 + $0x78] sm:$0xff] %vm336_vm0, %v1586_v36  ;;  %v1655_v17 = vsub.f32 %v1586_v36, %v2290_v39  ;;  %s2311_s4 = scalar_lea.vmem %s1794_s8, 16 }
 0x3aa   :  { %p2312_p5 = scmp.ne.s32.totalorder %s1794_s8, %s2311_s4  ;;  %p2317_p7 = scmp.lt.s32.totalorder %s2315_s0, %s2311_s4 }
 0x3ab   :  { %v1735_v16 = vmul.f32 %v1655_v17, %v1655_v17 }
 0x3ac   :  { %p2318_p8 = por %p2317_p7, %p2316_p6 }
 0x3ad   :  { %v1765_v46 = vsel %vm336_vm0, %v1735_v16, 0.0 }
 0x3ae   :  { %v1766_v47 = vadd.f32 %v1765_v46, %v1764_v42  ;;  %p2319_p9 = pnand %p2318_p8, %p2312_p5 }
 0x3b0   :  { %v1767_v48 = vrot.slane %v1766_v47, 4 }
 0x3b2   :  { %v1768_v49 = vadd.f32 %v1767_v48, %v1766_v47 }
 0x3b4   :  { %v1769_v50 = vrot.slane %v1768_v49, 2 }
 0x3b6   :  { %v1770_v51 = vadd.f32 %v1769_v50, %v1768_v49 }
 0x3b8   :  { %v1771_v52 = vrot.slane %v1770_v51, 1 }
 0x3ba   :  { %v1772_v54 = vadd.f32 %v1771_v52, %v1770_v51 }
 0x3bc   :  { %1774 = vst.msk [vmem:[#allocation4] sm:$0x1] %vm1773_vm8, %v1772_v54 }
 0x3bd   :  { %2322 = shalt.err (!%p2319_p9)
}
 0x3be   :  { %1796 = dma.vmem_to_hbm [thread:$0]  %s1794_s8, 16, %s3286_s6, [#allocation5]  }
 0x3bf   :  { %2331 = dma.done.wait [#allocation3], 16  }
 0x3c0   :  { %2332 = vsyncadd [#allocation3], 4294967280 }
 0x3c1   :  { %2333 = dma.done.wait [#allocation5], 16  }
 0x3c2   :  { %2334 = vsyncadd [#allocation5], 4294967280 }
 0x3c3   :  { %1805 = vsyncpa [#allocation3], 1 }
 0x3c4   :  { %1806 = vsyncpa [#allocation5], 1 }

</bundles_post_ra>
